<compile_context>
chip_gen: v7x
topology: tpu7x:2x2x1
jax: 0.10.0
libtpu: 0.0.40
codegen_flags: <defaults>
</compile_context>

<pallas_src>
import functools
import math

import jax
import jax.numpy as jnp
from jax.experimental import pallas as pl
from jax.experimental.pallas import tpu as pltpu

# gv config from the original module (synthetic, chosen small & consistent)
GV = {"minkernel": 2, "expandnum": 3, "expandsize": 2}
KERNEL_SIZES = tuple(GV["minkernel"] * GV["expandsize"] ** i for i in range(GV["expandnum"]))
# -> (2, 4, 8)


def _seqpools_kernel(x_ref, w_ref, b_ref, out_ref, carry_ref, *, kernel_sizes, halo):
    """cs1 = x @ W + b ; out = [cs1, causal avg-pools of cs1] (lane-dense, no inp passthrough)."""
    tb, bb, I = x_ref.shape
    C = w_ref.shape[1]
    t_idx = pl.program_id(1)

    # --- CssModel (approximated as linear) on the MXU: (tb*bb, I) @ (I, C) ---
    xf = x_ref[...].reshape(tb * bb, I)
    cs = jnp.dot(xf, w_ref[...], preferred_element_type=jnp.float32) + b_ref[...].astype(jnp.float32)
    cs1 = cs.reshape(tb, bb, C)

    # --- Left context for the causal windows ---
    # First T-tile: replicate the first timestep (exactly AvgPools' causal padding).
    # Later T-tiles: use the carried tail of the previous tile's cs1.
    @pl.when(t_idx == 0)
    def _():
        carry_ref[...] = jnp.broadcast_to(cs1[0:1], (halo, bb, C))

    padded = jnp.concatenate([carry_ref[...], cs1], axis=0)  # (tb + halo, bb, C)
    carry_ref[...] = cs1[tb - halo:tb]                       # context for the next T-tile

    # --- Geometric-doubling windowed sums: 3 adds instead of 2 + 4 + 8 = 14 ---
    # s[i] = window sum of `width` elements of `padded` ending at padded index i + off.
    pieces = [cs1]
    s, width, off = padded, 1, 0
    for k in kernel_sizes:
        while width < k:
            s = s[width:] + s[:-width]
            off += width
            width *= 2
        pieces.append(s[halo - off: halo - off + tb] * (1.0 / k))

    # Single lane-dense store: (tb, bb, (1 + len(kernel_sizes)) * C), here 4*C = 128.
    out_ref[...] = jnp.concatenate(pieces, axis=-1).astype(out_ref.dtype)


def seqpools_pallas(inp, x, w, b, kernel_sizes=KERNEL_SIZES, *,
                    t_block=64, b_block=None, matmul_dtype=None):
    T, B, I = x.shape
    C = w.shape[1]
    ks = tuple(sorted(kernel_sizes))
    nk = len(ks)
    assert all(k >= 1 and (k & (k - 1)) == 0 for k in ks), "doubling scheme needs power-of-two kernels"
    halo = max(ks) - 1

    b_block = B if b_block is None else b_block
    t_block = min(t_block, T)
    assert T % t_block == 0 and B % b_block == 0, "pad T/B to tile multiples in the caller"
    assert t_block >= halo, "t_block must cover the pooling halo"

    if matmul_dtype is not None:  # e.g. jnp.bfloat16 on v6e/v7x (accumulation stays f32)
        x = x.astype(matmul_dtype)
        w = w.astype(matmul_dtype)

    kernel = functools.partial(_seqpools_kernel, kernel_sizes=ks, halo=halo)
    pools = pl.pallas_call(
        kernel,
        out_shape=jax.ShapeDtypeStruct((T, B, (1 + nk) * C), inp.dtype),
        grid_spec=pltpu.PrefetchScalarGridSpec(
            num_scalar_prefetch=0,
            grid=(B // b_block, T // t_block),
            in_specs=[
                pl.BlockSpec((t_block, b_block, I), lambda bi, ti: (ti, bi, 0)),
                pl.BlockSpec((I, C), lambda bi, ti: (0, 0)),
                pl.BlockSpec((1, C), lambda bi, ti: (0, 0)),
            ],
            out_specs=pl.BlockSpec((t_block, b_block, (1 + nk) * C), lambda bi, ti: (ti, bi, 0)),
            scratch_shapes=[pltpu.VMEM((halo, b_block, C), jnp.float32)],
        ),
        compiler_params=pltpu.CompilerParams(
            dimension_semantics=("parallel", "arbitrary"),
        ),
    )(x, w, b)

    # `inp` is a pure copy -- keep it out of the kernel and concat here to preserve
    # the original module's [inp, cs1, pools...] output.
    return jnp.concatenate([inp, pools], axis=-1)


def seqpools_ref(inp, x, w, b, kernel_sizes=KERNEL_SIZES):
    """Pure-JAX reference mirroring the PyTorch forward (CssModel ~ linear)."""
    T = x.shape[0]
    cs1 = jnp.einsum("tbi,ic->tbc", x, w) + b
    outs = [inp, cs1]
    for k in kernel_sizes:
        if k > 1:
            pad = jnp.broadcast_to(cs1[0:1], (k - 1,) + cs1.shape[1:])
            padded = jnp.concatenate([pad, cs1], axis=0)
        else:
            padded = cs1
        pooled = sum(padded[j:j + T] for j in range(k)) / k
        outs.append(pooled)
    return jnp.concatenate(outs, axis=-1)


if __name__ == "__main__":
    # Small but kernel-friendly shapes: seq T=256 (4 T-tiles of 64), batch B=8, inp features
    # Din=32, x features (inputsize) I=128, crosssize C=32 -> kernel output width 4*C=128
    # (lane-dense); full module output width = 32 + 128 = 160.
    T, B, Din, I, C = 256, 8, 32, 128, 32

    key = jax.random.PRNGKey(0)
    k_inp, k_x, k_w, k_b = jax.random.split(key, 4)
    inp = jax.random.normal(k_inp, (T, B, Din), dtype=jnp.float32)
    x = jax.random.normal(k_x, (T, B, I), dtype=jnp.float32)
    # deterministic parameter init for the CssModel-as-linear projection
    w = jax.random.normal(k_w, (I, C), dtype=jnp.float32) * (1.0 / math.sqrt(I))
    b = jax.random.normal(k_b, (1, C), dtype=jnp.float32) * 0.01

    out = jax.block_until_ready(seqpools_pallas(inp, x, w, b))
    ref = jax.block_until_ready(seqpools_ref(inp, x, w, b))

    assert out.shape == (T, B, Din + C * (1 + len(KERNEL_SIZES))), out.shape
    assert jnp.allclose(out, ref, atol=1e-3, rtol=1e-3), float(jnp.max(jnp.abs(out - ref)))

    print("KERNEL_OK")
</pallas_src>

<mosaic_0001>
module attributes {stable_mosaic.version = 11 : i64} {
  func.func @_seqpools_kernel(%arg0: i32, %arg1: i32, %arg2: memref<64x8x128xf32, #tpu.memory_space<vmem>>, %arg3: memref<128x32xf32, #tpu.memory_space<vmem>>, %arg4: memref<1x32xf32, #tpu.memory_space<vmem>>, %arg5: memref<64x8x128xf32, #tpu.memory_space<vmem>>, %arg6: memref<7x8x32xf32, #tpu.memory_space<vmem>>) attributes {dimension_semantics = [#tpu.dimension_semantics<parallel>, #tpu.dimension_semantics<arbitrary>], iteration_bounds = array<i64: 1, 4>, scalar_prefetch = 0 : i64, scratch_operands = 1 : i64, tpu.core_type = #tpu.core_type<tc>, window_params = [{transform_indices = @transform_0, window_bounds = array<i64: 64, 8, 128>}, {pipeline_mode = #tpu.pipeline_mode<synchronous>, transform_indices = @transform_1, window_bounds = array<i64: 128, 32>}, {pipeline_mode = #tpu.pipeline_mode<synchronous>, transform_indices = @transform_2, window_bounds = array<i64: 1, 32>}, {transform_indices = @transform_3, window_bounds = array<i64: 64, 8, 128>}]} {
    %c0 = arith.constant 0 : index
    %c0_0 = arith.constant 0 : index
    %c0_1 = arith.constant 0 : index
    %0 = vector.load %arg2[%c0, %c0_0, %c0_1] : memref<64x8x128xf32, #tpu.memory_space<vmem>>, vector<64x8x128xf32>
    %1 = vector.shape_cast %0 : vector<64x8x128xf32> to vector<512x128xf32>
    %c0_2 = arith.constant 0 : index
    %c0_3 = arith.constant 0 : index
    %2 = vector.load %arg3[%c0_2, %c0_3] : memref<128x32xf32, #tpu.memory_space<vmem>>, vector<128x32xf32>
    %cst = arith.constant dense<0.000000e+00> : vector<512x32xf32>
    %3 = tpu.matmul %1, %2, %cst {dimension_numbers = #tpu.dot_dimension_numbers<[1], [0], [0], [1], [0, 0, 1, 1], [], []>} : vector<512x128xf32>, vector<128x32xf32>, vector<512x32xf32> -> vector<512x32xf32>
    %c0_4 = arith.constant 0 : index
    %c0_5 = arith.constant 0 : index
    %4 = vector.load %arg4[%c0_4, %c0_5] : memref<1x32xf32, #tpu.memory_space<vmem>>, vector<1x32xf32>
    %5 = vector.broadcast %4 : vector<1x32xf32> to vector<512x32xf32>
    %6 = arith.addf %3, %5 : vector<512x32xf32>
    %7 = vector.shape_cast %6 : vector<512x32xf32> to vector<64x8x32xf32>
    %c0_i32 = arith.constant 0 : i32
    %8 = arith.cmpi eq, %arg1, %c0_i32 : i32
    %9 = arith.extui %8 : i1 to i32
    %c0_i32_6 = arith.constant 0 : i32
    %10 = arith.cmpi ne, %9, %c0_i32_6 : i32
    scf.if %10 {
      %34 = vector.extract_strided_slice %7 {offsets = [0, 0, 0], sizes = [1, 8, 32], strides = [1, 1, 1]} : vector<64x8x32xf32> to vector<1x8x32xf32>
      %35 = vector.shape_cast %34 : vector<1x8x32xf32> to vector<1x8x32xf32>
      %36 = vector.broadcast %35 : vector<1x8x32xf32> to vector<7x8x32xf32>
      %c0_19 = arith.constant 0 : index
      %c0_20 = arith.constant 0 : index
      %c0_21 = arith.constant 0 : index
      %37 = vector.load %arg6[%c0_19, %c0_20, %c0_21] : memref<7x8x32xf32, #tpu.memory_space<vmem>>, vector<7x8x32xf32>
      tpu.vector_store %arg6[%c0_19, %c0_20, %c0_21], %36 {strides = array<i32>} : memref<7x8x32xf32, #tpu.memory_space<vmem>>, vector<7x8x32xf32>,
    } else {
    }
    %c0_7 = arith.constant 0 : index
    %c0_8 = arith.constant 0 : index
    %c0_9 = arith.constant 0 : index
    %11 = vector.load %arg6[%c0_7, %c0_8, %c0_9] : memref<7x8x32xf32, #tpu.memory_space<vmem>>, vector<7x8x32xf32>
    %12 = tpu.concatenate %11, %7 in 0 : vector<7x8x32xf32>, vector<64x8x32xf32> -> vector<71x8x32xf32>
    %13 = vector.extract_strided_slice %7 {offsets = [57, 0, 0], sizes = [7, 8, 32], strides = [1, 1, 1]} : vector<64x8x32xf32> to vector<7x8x32xf32>
    %c0_10 = arith.constant 0 : index
    %c0_11 = arith.constant 0 : index
    %c0_12 = arith.constant 0 : index
    %14 = vector.load %arg6[%c0_10, %c0_11, %c0_12] : memref<7x8x32xf32, #tpu.memory_space<vmem>>, vector<7x8x32xf32>
    tpu.vector_store %arg6[%c0_10, %c0_11, %c0_12], %13 {strides = array<i32>} : memref<7x8x32xf32, #tpu.memory_space<vmem>>, vector<7x8x32xf32>,
    %15 = vector.extract_strided_slice %12 {offsets = [1, 0, 0], sizes = [70, 8, 32], strides = [1, 1, 1]} : vector<71x8x32xf32> to vector<70x8x32xf32>
    %16 = vector.extract_strided_slice %12 {offsets = [0, 0, 0], sizes = [70, 8, 32], strides = [1, 1, 1]} : vector<71x8x32xf32> to vector<70x8x32xf32>
    %17 = arith.addf %15, %16 : vector<70x8x32xf32>
    %18 = vector.extract_strided_slice %17 {offsets = [6, 0, 0], sizes = [64, 8, 32], strides = [1, 1, 1]} : vector<70x8x32xf32> to vector<64x8x32xf32>
    %cst_13 = arith.constant 5.000000e-01 : f32
    %19 = vector.broadcast %cst_13 : f32 to vector<64x8x32xf32>
    %20 = arith.mulf %18, %19 : vector<64x8x32xf32>
    %21 = vector.extract_strided_slice %17 {offsets = [2, 0, 0], sizes = [68, 8, 32], strides = [1, 1, 1]} : vector<70x8x32xf32> to vector<68x8x32xf32>
    %22 = vector.extract_strided_slice %17 {offsets = [0, 0, 0], sizes = [68, 8, 32], strides = [1, 1, 1]} : vector<70x8x32xf32> to vector<68x8x32xf32>
    %23 = arith.addf %21, %22 : vector<68x8x32xf32>
    %24 = vector.extract_strided_slice %23 {offsets = [4, 0, 0], sizes = [64, 8, 32], strides = [1, 1, 1]} : vector<68x8x32xf32> to vector<64x8x32xf32>
    %cst_14 = arith.constant 2.500000e-01 : f32
    %25 = vector.broadcast %cst_14 : f32 to vector<64x8x32xf32>
    %26 = arith.mulf %24, %25 : vector<64x8x32xf32>
    %27 = vector.extract_strided_slice %23 {offsets = [4, 0, 0], sizes = [64, 8, 32], strides = [1, 1, 1]} : vector<68x8x32xf32> to vector<64x8x32xf32>
    %28 = vector.extract_strided_slice %23 {offsets = [0, 0, 0], sizes = [64, 8, 32], strides = [1, 1, 1]} : vector<68x8x32xf32> to vector<64x8x32xf32>
    %29 = arith.addf %27, %28 : vector<64x8x32xf32>
    %cst_15 = arith.constant 1.250000e-01 : f32
    %30 = vector.broadcast %cst_15 : f32 to vector<64x8x32xf32>
    %31 = arith.mulf %29, %30 : vector<64x8x32xf32>
    %32 = tpu.concatenate %7, %20, %26, %31 in 2 : vector<64x8x32xf32>, vector<64x8x32xf32>, vector<64x8x32xf32>, vector<64x8x32xf32> -> vector<64x8x128xf32>
    %c0_16 = arith.constant 0 : index
    %c0_17 = arith.constant 0 : index
    %c0_18 = arith.constant 0 : index
    %33 = vector.load %arg5[%c0_16, %c0_17, %c0_18] : memref<64x8x128xf32, #tpu.memory_space<vmem>>, vector<64x8x128xf32>
    tpu.vector_store %arg5[%c0_16, %c0_17, %c0_18], %32 {strides = array<i32>} : memref<64x8x128xf32, #tpu.memory_space<vmem>>, vector<64x8x128xf32>,
    return
  }
  func.func @transform_0(%arg0: i32, %arg1: i32) -> (i32, i32, i32) {
    %c0_i32 = arith.constant 0 : i32
    %c0_i32_0 = arith.constant 0 : i32
    return %arg1, %arg0, %c0_i32 : i32, i32, i32
  }
  func.func @transform_1(%arg0: i32, %arg1: i32) -> (i32, i32) {
    %c0_i32 = arith.constant 0 : i32
    %c0_i32_0 = arith.constant 0 : i32
    %c0_i32_1 = arith.constant 0 : i32
    return %c0_i32, %c0_i32_0 : i32, i32
  }
  func.func @transform_2(%arg0: i32, %arg1: i32) -> (i32, i32) {
    %c0_i32 = arith.constant 0 : i32
    %c0_i32_0 = arith.constant 0 : i32
    %c0_i32_1 = arith.constant 0 : i32
    return %c0_i32, %c0_i32_0 : i32, i32
  }
  func.func @transform_3(%arg0: i32, %arg1: i32) -> (i32, i32, i32) {
    %c0_i32 = arith.constant 0 : i32
    %c0_i32_0 = arith.constant 0 : i32
    return %arg1, %arg0, %c0_i32 : i32, i32, i32
  }
}

</mosaic_0001>

<bundles_post_ra>
// kernel: tpu_custom_call.1
= control target key start
LH: loop header
LB: loop body
LE: loop exit
PB: predicated region body
PF: predicated region fallthrough
CT: control target
= control target key end

     0   :  { %8 = vsyncpa [#allocation4], 0  ;;  %s4734_s0 = inlined_call_operand.hbm [shape: f32[256,8,128], index: 0, kind: input, shape index: {}]   ;;  %s4735_s1 = inlined_call_operand.vmem [shape: f32[128,32], index: 1, kind: input, shape index: {}]   ;;  %s4736_s2 = inlined_call_operand.vmem [shape: f32[1,32], index: 2, kind: input, shape index: {}]   ;;  %s4737_s3 = inlined_call_operand.hbm [shape: f32[256,8,128], index: 3, kind: output, shape index: {}]  }
   0x1   :  { %10 = vsyncpa [#allocation4 + $0x1], 0 }
   0x2   :  { %11 = vsyncpa [#allocation5], 0 }
   0x3   :  { %13 = vsyncpa [#allocation5 + $0x1], 0  ;;  %s2714_s12 = smov 0   ;;  %s2716_s13 = smov 0  }
   0x4   :  { %s2718_s14 = smov 0   ;;  %s2720_s15 = smov 0  }
   0x5   :  { %s2722_s16 = smov 0   ;;  %s2724_s17 = smov 0  }
   0x6 LB: > { %s2227_s18 = sadd.s32 4294967295, %s2683_s17   ;;  %s2228_s19 = sadd.s32 4294967294, %s2683_s17   ;;  %s2683_s17 = sphi %s2724_s17, %s19_s17   ;;  %s2679_s16 = sphi %s2722_s16, %s5298_s16   ;;  %s2675_s15 = sphi %s2720_s15, %s5297_s15   ;;  %s2671_s14 = sphi %s2718_s14, %s5296_s14   ;;  %s2667_s13 = sphi %s2716_s13, %s5295_s13   ;;  %s2663_s12 = sphi %s2714_s12, %s5294_s12  }
   0x7   : > { %s28_s20 = sadd.s32 1, %s2679_s16  ;;  %s40_s21 = sadd.s32 1, %s2671_s14 }
   0x8   : > { %p29_p0 = scmp.ge.s32.totalorder %s28_s20, 4  ;;  %p47_p1 = scmp.ne.s32.totalorder %s2671_s14, %s2667_s13 }
   0x9   : > { %p48_p2 = scmp.eq.s32.totalorder %s2683_s17, 0  ;;  %p53_p3 = scmp.ne.s32.totalorder %s2667_s13, %s2663_s12 }
   0xa   : > { %s5300_s20 = smov (%p29_p0, %s28_s20), 0  ;;  %p54_p5 = scmp.eq.s32.totalorder %s2227_s18, 0 }
   0xb   : > { %p2755_p4 = por %p48_p2, %p47_p1  ;;  %s35_s23 = ssub.s32 %s2679_s16, %s5300_s20 }
   0xc   : > { %p121_p6 = scmp.eq.s32.totalorder %s2227_s18, 3  ;;  %p38_p7 = scmp.eq.s32.totalorder %s35_s23, 0 }
   0xd   : > { %p2761_p8 = por %p54_p5, %p53_p3  ;;  %p127_p10 = scmp.eq.s32.totalorder %s2228_s19, 3 }
   0xe   : > { %p2765_p9 = por %p121_p6, %p47_p1  ;;  %p2514_p12 = scmp.lt.s32.totalorder %s2683_s17, 4 }
   0xf   : > { %s2770_s26 = scalar_select %p38_p7, %s2671_s14, %s40_s21  }
  0x10   : > { %s4893_s25 = scalar_select %p2765_p9, 1, 0 }
  0x11   : > { %p2772_p11 = por %p127_p10, %p53_p3  ;;  %s153_s28 = sand.u32 1, %s2671_s14  }
  0x12   : > { %s2231_s29 = sshll.u32 %s153_s28, 9  ;;  %s2244_s30 = sshll.u32 %s2679_s16, 13 }
  0x13   : > { %s4894_s27 = scalar_select %p2772_p11, 1, 0 }
  0x14   : > { %s2782_s6 = scalar_lea.hbm %s4734_s0, %s2244_s30  ;;  %s157_s7 = scalar_lea.vmem [#allocation3], %s2231_s29 }
  0x15   : > { %s165_s8 = sshll.u32 %s157_s7, 4  ;;  %p2788_p13 = pnand %p2514_p12, %p2755_p4  ;;  %s2784_s8 = int_to_ptr.vmem [resolvable:$true] %s165_s8 }
  0x16   : > { %s2793_s10 = scalar_lea.sflag [#allocation4], %s153_s28  ;;  %s2571_s11 = scalar_lea.hbm %s2782_s6, 8192 }
  0x17   : > { %p2572_p1 = scmp.ne.s32.totalorder %s2782_s6, %s2571_s11  ;;  %p2573_p2 = pneg %p2788_p13 }
  0x18   : > { %s2576_s21 = scalar_lea.hbm %s4734_s0, 32768  ;;  %p2577_p4 = scmp.lt.u32.totalorder %s2782_s6, %s4734_s0 }
  0x19   : > { %p2574_p3 = pnand %p2573_p2, %p2572_p1  ;;  %p2578_p6 = scmp.lt.u32.totalorder %s2576_s21, %s2571_s11 }
  0x1a   : > { %p2580_p10 = scmp.lt.u32.totalorder %s2571_s11, %s2782_s6 }
  0x1b   : > { %p2575_p5 = pneg %p2574_p3  ;;  %p2579_p7 = por %p2578_p6, %p2577_p4 }
  0x1d   : > { %p2581_p12 = por %p2580_p10, %p2579_p7 }
  0x1f   : > { %p2582_p0 = pnand %p2581_p12, %p2575_p5 }
  0x21   : > { %2585 = shalt.err (!%p2582_p0)
}
  0x22   : > { %s2586_s28 = scalar_lea.vmem %s2784_s8, 8192  ;;  %s2685_s29 = smov [#allocation3]  }
  0x23   : > { %p2587_p1 = scmp.ne.s32.totalorder %s2784_s8, %s2586_s28  ;;  %s2591_s30 = sshll.u32 %s2685_s29, 4  ;;  %s2592_s30 = int_to_ptr.vmem [resolvable:$false] %s2591_s30 }
  0x24   : > { %s2593_s4 = scalar_lea.vmem %s2592_s30, 16384  ;;  %p2594_p9 = scmp.lt.s32.totalorder %s2784_s8, %s2592_s30 }
  0x25   : > { %p2589_p3 = pnand %p2587_p1, %p2573_p2  ;;  %p2595_p4 = scmp.lt.s32.totalorder %s2593_s4, %s2586_s28 }
  0x27   : > { %p2590_p11 = pneg %p2589_p3  ;;  %p2596_p6 = por %p2595_p4, %p2594_p9 }
  0x29   : > { %p2597_p7 = pnand %p2596_p6, %p2590_p11 }
  0x2b   : > { %2600 = shalt.err (!%p2597_p7)
}
  0x2c   : > { %s2686_s5 = smov 128   ;;  %s2687_s7 = smov 8  }
  0x2d   : > { %2509 = dma.hbm_to_vmem [thread:$0]  (!%p2788_p13), %s2782_s6, 8192, %s2784_s8, %s2793_s10, %s2686_s5, %s2686_s5, %s2687_s7  }
  0x2e   : > { %p173_p0 = scmp.lt.s32.totalorder %s2683_s17, 5  ;;  %p4896_p2 = scmp.ge.s32.totalorder %s2683_s17, 1 }
  0x30   : > { %p174_p5 = pnand %p4896_p2, %p173_p0 }
  0x32   : > { %177 = sbr.rel (%p174_p5) target bundleno = 887 (0x377), region = 32 }
  0x39   : > { %s2825_s11 = sand.u32 1, %s2667_s13  }
  0x3a   : > { %s2235_s18 = sshll.u32 %s2825_s11, 9  ;;  %s180_s19 = scalar_lea.sflag [#allocation4], %s2825_s11 }
  0x3b   : > { %s2831_s21 = scalar_lea.vmem [#allocation3], %s2235_s18 }
  0x3c   : > { %2654 = dma.done.wait (%p2761_p8), %s180_s19, 8192  }
  0x3d   : > { %2656 = vsyncadd (%p2761_p8), %s180_s19, 4294959104  ;;  %v272_v0 = vld [vmem:[%s4735_s1] sm:$0xff]  ;;  %v273_v1 = vld [vmem:[%s4735_s1 + $0x8] sm:$0xff]  ;;  %p2238_p8 = scmp.ne.s32.totalorder %s2675_s15, 0 }
  0x3e   : > { %v274_v2 = vld [vmem:[%s4735_s1 + $0x10] sm:$0xff]  ;;  %v2454_v3 = vpack.c.bf16 %v273_v1, %v272_v0  ;;  %v275_v4 = vld [vmem:[%s4735_s1 + $0x18] sm:$0xff]  ;;  %v276_v6 = vld [vmem:[%s4735_s1 + $0x20] sm:$0xff]  ;;  %vm684_vm0 = vcmask (!%p2238_p8), 261120  }
  0x3f   : > { %v2458_v5 = vpack.c.bf16 %v275_v4, %v274_v2  ;;  %v277_v7 = vld [vmem:[%s4735_s1 + $0x28] sm:$0xff]  ;;  %v208_v9 = vld [vmem:[%s2831_s21] sm:$0xff]  ;;  %v278_v11 = vld [vmem:[%s4735_s1 + $0x30] sm:$0xff] }
  0x40   : > { %2455 = vmatprep.subr.bf16.mxu0 %v2454_v3  ;;  %2486 = vmatprep.subr.bf16.mxu1 %v2454_v3  ;;  %v2462_v8 = vpack.c.bf16 %v277_v7, %v276_v6  ;;  %v240_v10 = vld [vmem:[%s2831_s21 + $0x100] sm:$0xff]  ;;  %v280_v14 = vld [vmem:[%s4735_s1 + $0x40] sm:$0xff]  ;;  %v281_v15 = vld [vmem:[%s4735_s1 + $0x48] sm:$0xff] }
  0x41   : > { %2457 = vmatpush3.bf16.msra.mxu0 %v2454_v3  ;;  %2494 = vmatpush3.bf16.msra.mxu1 %v2454_v3  ;;  %v279_v12 = vld [vmem:[%s4735_s1 + $0x38] sm:$0xff]  ;;  %v2470_v16 = vpack.c.bf16 %v281_v15, %v280_v14  ;;  %v282_v17 = vld [vmem:[%s4735_s1 + $0x50] sm:$0xff]  ;;  %v284_v20 = vld [vmem:[%s4735_s1 + $0x60] sm:$0xff] }
  0x42   : > { %2459 = vmatprep.subr.bf16.mxu0 %v2458_v5  ;;  %2487 = vmatprep.subr.bf16.mxu1 %v2458_v5  ;;  %v2466_v13 = vpack.c.bf16 %v279_v12, %v278_v11  ;;  %v283_v18 = vld [vmem:[%s4735_s1 + $0x58] sm:$0xff]  ;;  %v285_v21 = vld [vmem:[%s4735_s1 + $0x68] sm:$0xff]  ;;  %v286_v23 = vld [vmem:[%s4735_s1 + $0x70] sm:$0xff] }
  0x43   : > { %2358 = vmatprep.mubr.f32.mxu0 %v208_v9  ;;  %2406 = vmatprep.mubr.f32.mxu1 %v240_v10  ;;  %v2474_v19 = vpack.c.bf16 %v283_v18, %v282_v17  ;;  %v2478_v22 = vpack.c.bf16 %v285_v21, %v284_v20  ;;  %v287_v24 = vld [vmem:[%s4735_s1 + $0x78] sm:$0xff]  ;;  %v209_v26 = vld [vmem:[%s2831_s21 + $0x8] sm:$0xff]  ;;  %v210_v28 = vld [vmem:[%s2831_s21 + $0x10] sm:$0xff] }
  0x44   : > { %v2482_v25 = vpack.c.bf16 %v287_v24, %v286_v23  ;;  %v241_v27 = vld [vmem:[%s2831_s21 + $0x108] sm:$0xff]  ;;  %v242_v29 = vld [vmem:[%s2831_s21 + $0x110] sm:$0xff]  ;;  %v211_v30 = vld [vmem:[%s2831_s21 + $0x18] sm:$0xff] }
  0x45   : > { %2461 = vmatpush3.bf16.msra.mxu0 %v2458_v5  ;;  %2495 = vmatpush3.bf16.msra.mxu1 %v2458_v5  ;;  %v243_v31 = vld [vmem:[%s2831_s21 + $0x118] sm:$0xff]  ;;  %v212_v32 = vld [vmem:[%s2831_s21 + $0x20] sm:$0xff]  ;;  %v213_v34 = vld [vmem:[%s2831_s21 + $0x28] sm:$0xff] }
  0x46   : > { %2463 = vmatprep.subr.bf16.mxu0 %v2462_v8  ;;  %2488 = vmatprep.subr.bf16.mxu1 %v2462_v8  ;;  %v244_v33 = vld [vmem:[%s2831_s21 + $0x120] sm:$0xff]  ;;  %v245_v35 = vld [vmem:[%s2831_s21 + $0x128] sm:$0xff]  ;;  %v214_v36 = vld [vmem:[%s2831_s21 + $0x30] sm:$0xff] }
  0x47   : > { %v246_v37 = vld [vmem:[%s2831_s21 + $0x130] sm:$0xff]  ;;  %v215_v38 = vld [vmem:[%s2831_s21 + $0x38] sm:$0xff]  ;;  %v216_v40 = vld [vmem:[%s2831_s21 + $0x40] sm:$0xff] }
  0x48   : > { %v247_v39 = vld [vmem:[%s2831_s21 + $0x138] sm:$0xff]  ;;  %v248_v41 = vld [vmem:[%s2831_s21 + $0x140] sm:$0xff]  ;;  %v217_v42 = vld [vmem:[%s2831_s21 + $0x48] sm:$0xff] }
  0x49   : > { %2465 = vmatpush3.bf16.msra.mxu0 %v2462_v8  ;;  %2496 = vmatpush3.bf16.msra.mxu1 %v2462_v8  ;;  %v249_v43 = vld [vmem:[%s2831_s21 + $0x148] sm:$0xff]  ;;  %v218_v44 = vld [vmem:[%s2831_s21 + $0x50] sm:$0xff]  ;;  %v219_v46 = vld [vmem:[%s2831_s21 + $0x58] sm:$0xff] }
  0x4a   : > { %2467 = vmatprep.subr.bf16.mxu0 %v2466_v13  ;;  %2489 = vmatprep.subr.bf16.mxu1 %v2466_v13  ;;  %v250_v45 = vld [vmem:[%s2831_s21 + $0x150] sm:$0xff]  ;;  %v251_v47 = vld [vmem:[%s2831_s21 + $0x158] sm:$0xff]  ;;  %v220_v48 = vld [vmem:[%s2831_s21 + $0x60] sm:$0xff] }
  0x4b   : > { %v252_v49 = vld [vmem:[%s2831_s21 + $0x160] sm:$0xff]  ;;  %v221_v50 = vld [vmem:[%s2831_s21 + $0x68] sm:$0xff]  ;;  %v222_v52 = vld [vmem:[%s2831_s21 + $0x70] sm:$0xff] }
  0x4c   : > { %v253_v51 = vld [vmem:[%s2831_s21 + $0x168] sm:$0xff]  ;;  %v254_v53 = vld [vmem:[%s2831_s21 + $0x170] sm:$0xff]  ;;  %v223_v54 = vld [vmem:[%s2831_s21 + $0x78] sm:$0xff] }
  0x4d   : > { %2469 = vmatpush3.bf16.msra.mxu0 %v2466_v13  ;;  %2497 = vmatpush3.bf16.msra.mxu1 %v2466_v13  ;;  %v255_v55 = vld [vmem:[%s2831_s21 + $0x178] sm:$0xff]  ;;  %v224_v56 = vld [vmem:[%s2831_s21 + $0x80] sm:$0xff]  ;;  %v225_v58 = vld [vmem:[%s2831_s21 + $0x88] sm:$0xff] }
  0x4e   : > { %2471 = vmatprep.subr.bf16.mxu0 %v2470_v16  ;;  %2490 = vmatprep.subr.bf16.mxu1 %v2470_v16  ;;  %v256_v57 = vld [vmem:[%s2831_s21 + $0x180] sm:$0xff]  ;;  %v257_v59 = vld [vmem:[%s2831_s21 + $0x188] sm:$0xff]  ;;  %v226_v60 = vld [vmem:[%s2831_s21 + $0x90] sm:$0xff] }
  0x4f   : > { %v258_v61 = vld [vmem:[%s2831_s21 + $0x190] sm:$0xff]  ;;  %v227_v62 = vld [vmem:[%s2831_s21 + $0x98] sm:$0xff]  ;;  %v228_v0 = vld [vmem:[%s2831_s21 + $0xa0] sm:$0xff] }
  0x50   : > { %v259_v63 = vld [vmem:[%s2831_s21 + $0x198] sm:$0xff]  ;;  %v260_v1 = vld [vmem:[%s2831_s21 + $0x1a0] sm:$0xff]  ;;  %v229_v2 = vld [vmem:[%s2831_s21 + $0xa8] sm:$0xff] }
  0x51   : > { %2473 = vmatpush3.bf16.msra.mxu0 %v2470_v16  ;;  %2498 = vmatpush3.bf16.msra.mxu1 %v2470_v16  ;;  %v261_v3 = vld [vmem:[%s2831_s21 + $0x1a8] sm:$0xff]  ;;  %v230_v4 = vld [vmem:[%s2831_s21 + $0xb0] sm:$0xff]  ;;  %v231_v6 = vld [vmem:[%s2831_s21 + $0xb8] sm:$0xff] }
  0x52   : > { %2475 = vmatprep.subr.bf16.mxu0 %v2474_v19  ;;  %2491 = vmatprep.subr.bf16.mxu1 %v2474_v19  ;;  %v262_v5 = vld [vmem:[%s2831_s21 + $0x1b0] sm:$0xff]  ;;  %v263_v7 = vld [vmem:[%s2831_s21 + $0x1b8] sm:$0xff]  ;;  %v232_v8 = vld [vmem:[%s2831_s21 + $0xc0] sm:$0xff] }
  0x53   : > { %v264_v9 = vld [vmem:[%s2831_s21 + $0x1c0] sm:$0xff]  ;;  %v233_v10 = vld [vmem:[%s2831_s21 + $0xc8] sm:$0xff]  ;;  %v234_v12 = vld [vmem:[%s2831_s21 + $0xd0] sm:$0xff] }
  0x54   : > { %v265_v11 = vld [vmem:[%s2831_s21 + $0x1c8] sm:$0xff]  ;;  %v266_v13 = vld [vmem:[%s2831_s21 + $0x1d0] sm:$0xff]  ;;  %v235_v14 = vld [vmem:[%s2831_s21 + $0xd8] sm:$0xff] }
  0x55   : > { %2477 = vmatpush3.bf16.msra.mxu0 %v2474_v19  ;;  %2499 = vmatpush3.bf16.msra.mxu1 %v2474_v19  ;;  %v267_v15 = vld [vmem:[%s2831_s21 + $0x1d8] sm:$0xff]  ;;  %v236_v16 = vld [vmem:[%s2831_s21 + $0xe0] sm:$0xff]  ;;  %v237_v18 = vld [vmem:[%s2831_s21 + $0xe8] sm:$0xff] }
  0x56   : > { %2479 = vmatprep.subr.bf16.mxu0 %v2478_v22  ;;  %2492 = vmatprep.subr.bf16.mxu1 %v2478_v22  ;;  %v268_v17 = vld [vmem:[%s2831_s21 + $0x1e0] sm:$0xff]  ;;  %v269_v19 = vld [vmem:[%s2831_s21 + $0x1e8] sm:$0xff]  ;;  %v238_v20 = vld [vmem:[%s2831_s21 + $0xf0] sm:$0xff] }
  0x57   : > { %v270_v21 = vld [vmem:[%s2831_s21 + $0x1f0] sm:$0xff]  ;;  %v271_v23 = vld [vmem:[%s2831_s21 + $0x1f8] sm:$0xff]  ;;  %v2952_v24 = vld [vmem:[%s4736_s2] ss:$0 sm:$0xff] }
  0x59   : > { %2481 = vmatpush3.bf16.msra.mxu0 %v2478_v22  ;;  %2500 = vmatpush3.bf16.msra.mxu1 %v2478_v22  ;;  %v239_v22 = vld [vmem:[%s2831_s21 + $0xf8] sm:$0xff]  ;;  %s3148_s21 = scalar_lea.vmem [#allocation6], %s2235_s18 }
  0x5a   : > { %2483 = vmatprep.subr.bf16.mxu0 %v2482_v25  ;;  %2493 = vmatprep.subr.bf16.mxu1 %v2482_v25 }
  0x5d   : > { %2485 = vmatpush3.bf16.msra.mxu0 %v2482_v25  ;;  %2501 = vmatpush3.bf16.msra.mxu1 %v2482_v25 }
  0x60   : > { %2359 = vmatmul.mubr.f32.vlgmr.msra.gmra.mrb[0].mxu0 %v209_v26  ;;  %2407 = vmatmul.mubr.f32.vlgmr.msra.gmra.mrb[0].mxu1 %v241_v27 }
  0x61   : > { %2361 = vmatprep.mubr.f32.mxu0 %v210_v28  ;;  %2409 = vmatprep.mubr.f32.mxu1 %v242_v29 }
  0x64   : > { %2362 = vmatmul.mubr.f32.gmra.mrb[2].mxu0 %v211_v30  ;;  %2410 = vmatmul.mubr.f32.gmra.mrb[2].mxu1 %v243_v31 }
  0x65   : > { %2364 = vmatprep.mubr.f32.mxu0 %v212_v32  ;;  %2412 = vmatprep.mubr.f32.mxu1 %v244_v33 }
  0x68   : > { %2365 = vmatmul.mubr.f32.gmra.mrb[4].mxu0 %v213_v34  ;;  %2413 = vmatmul.mubr.f32.gmra.mrb[4].mxu1 %v245_v35 }
  0x69   : > { %2367 = vmatprep.mubr.f32.mxu0 %v214_v36  ;;  %2415 = vmatprep.mubr.f32.mxu1 %v246_v37 }
  0x6c   : > { %2368 = vmatmul.mubr.f32.gmra.mrb[6].mxu0 %v215_v38  ;;  %2416 = vmatmul.mubr.f32.gmra.mrb[6].mxu1 %v247_v39 }
  0x6d   : > { %2370 = vmatprep.mubr.f32.mxu0 %v216_v40  ;;  %2418 = vmatprep.mubr.f32.mxu1 %v248_v41 }
  0x70   : > { %2371 = vmatmul.mubr.f32.gmra.mrb[8].mxu0 %v217_v42  ;;  %2419 = vmatmul.mubr.f32.gmra.mrb[8].mxu1 %v249_v43 }
  0x71   : > { %2373 = vmatprep.mubr.f32.mxu0 %v218_v44  ;;  %2421 = vmatprep.mubr.f32.mxu1 %v250_v45 }
  0x74   : > { %2374 = vmatmul.mubr.f32.gmra.mrb[10].mxu0 %v219_v46  ;;  %2422 = vmatmul.mubr.f32.gmra.mrb[10].mxu1 %v251_v47 }
  0x75   : > { %2376 = vmatprep.mubr.f32.mxu0 %v220_v48  ;;  %2424 = vmatprep.mubr.f32.mxu1 %v252_v49 }
  0x78   : > { %2377 = vmatmul.mubr.f32.gmra.mrb[12].mxu0 %v221_v50  ;;  %2425 = vmatmul.mubr.f32.gmra.mrb[12].mxu1 %v253_v51 }
  0x79   : > { %2379 = vmatprep.mubr.f32.mxu0 %v222_v52  ;;  %2427 = vmatprep.mubr.f32.mxu1 %v254_v53 }
  0x7c   : > { %2380 = vmatmul.mubr.f32.gmra.mrb[14].mxu0 %v223_v54  ;;  %2428 = vmatmul.mubr.f32.gmra.mrb[14].mxu1 %v255_v55 }
  0x7d   : > { %2382 = vmatprep.mubr.f32.mxu0 %v224_v56  ;;  %2430 = vmatprep.mubr.f32.mxu1 %v256_v57 }
  0x80   : > { %2383 = vmatmul.mubr.f32.gmra.mrb[16].mxu0 %v225_v58  ;;  %2431 = vmatmul.mubr.f32.gmra.mrb[16].mxu1 %v257_v59 }
  0x81   : > { %2385 = vmatprep.mubr.f32.mxu0 %v226_v60  ;;  %2433 = vmatprep.mubr.f32.mxu1 %v258_v61 }
  0x84   : > { %2386 = vmatmul.mubr.f32.gmra.mrb[18].mxu0 %v227_v62  ;;  %2434 = vmatmul.mubr.f32.gmra.mrb[18].mxu1 %v259_v63 }
  0x85   : > { %2388 = vmatprep.mubr.f32.mxu0 %v228_v0  ;;  %2436 = vmatprep.mubr.f32.mxu1 %v260_v1 }
  0x88   : > { %2389 = vmatmul.mubr.f32.gmra.mrb[20].mxu0 %v229_v2  ;;  %2437 = vmatmul.mubr.f32.gmra.mrb[20].mxu1 %v261_v3 }
  0x89   : > { %2391 = vmatprep.mubr.f32.mxu0 %v230_v4  ;;  %2439 = vmatprep.mubr.f32.mxu1 %v262_v5 }
  0x8c   : > { %2392 = vmatmul.mubr.f32.gmra.mrb[22].mxu0 %v231_v6  ;;  %2440 = vmatmul.mubr.f32.gmra.mrb[22].mxu1 %v263_v7 }
  0x8d   : > { %2394 = vmatprep.mubr.f32.mxu0 %v232_v8  ;;  %2442 = vmatprep.mubr.f32.mxu1 %v264_v9 }
  0x90   : > { %2395 = vmatmul.mubr.f32.gmra.mrb[24].mxu0 %v233_v10  ;;  %2443 = vmatmul.mubr.f32.gmra.mrb[24].mxu1 %v265_v11 }
  0x91   : > { %2397 = vmatprep.mubr.f32.mxu0 %v234_v12  ;;  %2445 = vmatprep.mubr.f32.mxu1 %v266_v13 }
  0x94   : > { %2398 = vmatmul.mubr.f32.gmra.mrb[26].mxu0 %v235_v14  ;;  %2446 = vmatmul.mubr.f32.gmra.mrb[26].mxu1 %v267_v15 }
  0x95   : > { %2400 = vmatprep.mubr.f32.mxu0 %v236_v16  ;;  %2448 = vmatprep.mubr.f32.mxu1 %v268_v17 }
  0x98   : > { %2401 = vmatmul.mubr.f32.gmra.mrb[28].mxu0 %v237_v18  ;;  %2449 = vmatmul.mubr.f32.gmra.mrb[28].mxu1 %v269_v19 }
  0x99   : > { %2403 = vmatprep.mubr.f32.mxu0 %v238_v20  ;;  %2451 = vmatprep.mubr.f32.mxu1 %v270_v21 }
  0x9c   : > { %2404 = vmatmul.mubr.f32.gmra.mrb[30].mxu0 %v239_v22  ;;  %2452 = vmatmul.mubr.f32.gmra.mrb[30].mxu1 %v271_v23 }
 0x133   : > { %v2360_v25 = vpop.f32.mrb[0].mxu0  ;;  %v2408_v26 = vpop.f32.mrb[0].mxu1 }
 0x134   : > { %v2955_v27 = vadd.f32 %v2360_v25, %v2952_v24  ;;  %v2958_v28 = vadd.f32 %v2408_v26, %v2952_v24  ;;  %v361_v29 = vpop.f32.mrb[1].mxu0  ;;  %v521_v30 = vpop.f32.mrb[1].mxu1 }
 0x135   : > { %v2961_v31 = vadd.f32 %v2952_v24, %v361_v29  ;;  %v2964_v32 = vadd.f32 %v2952_v24, %v521_v30 }
 0x136   : > { %4897 = vst [vmem:[#allocation9_spill] sm:$0xff] %v2955_v27  ;;  %4898 = vst [vmem:[#allocation10_spill] sm:$0xff] %v2958_v28 }
 0x137   : > { %4899 = vst [vmem:[#allocation11_spill] sm:$0xff] %v2961_v31  ;;  %4900 = vst [vmem:[#allocation12_spill] sm:$0xff] %v2964_v32  ;;  %v2363_v33 = vpop.f32.mrb[2].mxu0  ;;  %v2411_v34 = vpop.f32.mrb[2].mxu1 }
 0x138   : > { %v2967_v35 = vadd.f32 %v2363_v33, %v2952_v24  ;;  %v2970_v36 = vadd.f32 %v2411_v34, %v2952_v24  ;;  %v371_v37 = vpop.f32.mrb[3].mxu0  ;;  %v531_v38 = vpop.f32.mrb[3].mxu1  ;;  %685 = vst.msk [vmem:[#allocation2] sm:$0xff] (!%p2238_p8), %vm684_vm0, %v2961_v31  ;;  %686 = vst.msk [vmem:[#allocation2 + $0x8] sm:$0xff] (!%p2238_p8), %vm684_vm0, %v2961_v31 }
 0x139   : > { %v2973_v39 = vadd.f32 %v2952_v24, %v371_v37  ;;  %v2976_v40 = vadd.f32 %v2952_v24, %v531_v38  ;;  %687 = vst.msk [vmem:[#allocation2 + $0x10] sm:$0xff] (!%p2238_p8), %vm684_vm0, %v2961_v31  ;;  %688 = vst.msk [vmem:[#allocation2 + $0x18] sm:$0xff] (!%p2238_p8), %vm684_vm0, %v2961_v31 }
 0x13a   : > { %4901 = vst [vmem:[#allocation13_spill] sm:$0xff] %v2967_v35  ;;  %4902 = vst [vmem:[#allocation14_spill] sm:$0xff] %v2970_v36 }
 0x13b   : > { %4903 = vst [vmem:[#allocation15_spill] sm:$0xff] %v2973_v39  ;;  %4904 = vst [vmem:[#allocation16_spill] sm:$0xff] %v2976_v40  ;;  %v2366_v41 = vpop.f32.mrb[4].mxu0  ;;  %v2414_v42 = vpop.f32.mrb[4].mxu1 }
 0x13c   : > { %v2979_v43 = vadd.f32 %v2366_v41, %v2952_v24  ;;  %v2982_v44 = vadd.f32 %v2414_v42, %v2952_v24  ;;  %v381_v45 = vpop.f32.mrb[5].mxu0  ;;  %v541_v46 = vpop.f32.mrb[5].mxu1  ;;  %689 = vst.msk [vmem:[#allocation2 + $0x20] sm:$0xff] (!%p2238_p8), %vm684_vm0, %v2961_v31  ;;  %690 = vst.msk [vmem:[#allocation2 + $0x28] sm:$0xff] (!%p2238_p8), %vm684_vm0, %v2961_v31 }
 0x13d   : > { %v2985_v47 = vadd.f32 %v2952_v24, %v381_v45  ;;  %v2988_v48 = vadd.f32 %v2952_v24, %v541_v46  ;;  %691 = vst.msk [vmem:[#allocation2 + $0x30] sm:$0xff] (!%p2238_p8), %vm684_vm0, %v2961_v31 }
 0x13e   : > { %4905 = vst [vmem:[#allocation17_spill] sm:$0xff] %v2979_v43  ;;  %4906 = vst [vmem:[#allocation18_spill] sm:$0xff] %v2982_v44 }
 0x13f   : > { %4907 = vst [vmem:[#allocation19_spill] sm:$0xff] %v2985_v47  ;;  %4908 = vst [vmem:[#allocation20_spill] sm:$0xff] %v2988_v48  ;;  %v2369_v49 = vpop.f32.mrb[6].mxu0  ;;  %v2417_v50 = vpop.f32.mrb[6].mxu1 }
 0x140   : > { %v2991_v51 = vadd.f32 %v2369_v49, %v2952_v24  ;;  %v2994_v52 = vadd.f32 %v2417_v50, %v2952_v24  ;;  %v391_v53 = vpop.f32.mrb[7].mxu0  ;;  %v551_v54 = vpop.f32.mrb[7].mxu1 }
 0x141   : > { %v2997_v55 = vadd.f32 %v2952_v24, %v391_v53  ;;  %v3000_v56 = vadd.f32 %v2952_v24, %v551_v54 }
 0x142   : > { %4909 = vst [vmem:[#allocation21_spill] sm:$0xff] %v2991_v51  ;;  %4910 = vst [vmem:[#allocation22_spill] sm:$0xff] %v2994_v52 }
 0x143   : > { %4911 = vst [vmem:[#allocation23_spill] sm:$0xff] %v2997_v55  ;;  %4912 = vst [vmem:[#allocation24_spill] sm:$0xff] %v3000_v56  ;;  %v2372_v57 = vpop.f32.mrb[8].mxu0  ;;  %v2420_v58 = vpop.f32.mrb[8].mxu1 }
 0x144   : > { %v3003_v59 = vadd.f32 %v2372_v57, %v2952_v24  ;;  %v3006_v60 = vadd.f32 %v2420_v58, %v2952_v24  ;;  %v401_v61 = vpop.f32.mrb[9].mxu0  ;;  %v561_v62 = vpop.f32.mrb[9].mxu1 }
 0x145   : > { %v3009_v63 = vadd.f32 %v2952_v24, %v401_v61  ;;  %v3012_v0 = vadd.f32 %v2952_v24, %v561_v62 }
 0x146   : > { %4913 = vst [vmem:[#allocation25_spill] sm:$0xff] %v3003_v59  ;;  %4914 = vst [vmem:[#allocation26_spill] sm:$0xff] %v3006_v60 }
 0x147   : > { %4915 = vst [vmem:[#allocation27_spill] sm:$0xff] %v3009_v63  ;;  %4916 = vst [vmem:[#allocation28_spill] sm:$0xff] %v3012_v0  ;;  %v2375_v1 = vpop.f32.mrb[10].mxu0  ;;  %v2423_v2 = vpop.f32.mrb[10].mxu1 }
 0x148   : > { %v3015_v3 = vadd.f32 %v2375_v1, %v2952_v24  ;;  %v3018_v4 = vadd.f32 %v2423_v2, %v2952_v24  ;;  %v411_v5 = vpop.f32.mrb[11].mxu0  ;;  %v571_v6 = vpop.f32.mrb[11].mxu1 }
 0x149   : > { %v3021_v7 = vadd.f32 %v2952_v24, %v411_v5  ;;  %v3024_v8 = vadd.f32 %v2952_v24, %v571_v6 }
 0x14a   : > { %4917 = vst [vmem:[#allocation29_spill] sm:$0xff] %v3015_v3  ;;  %4918 = vst [vmem:[#allocation30_spill] sm:$0xff] %v3018_v4 }
 0x14b   : > { %4919 = vst [vmem:[#allocation31_spill] sm:$0xff] %v3021_v7  ;;  %4920 = vst [vmem:[#allocation32_spill] sm:$0xff] %v3024_v8  ;;  %v2378_v9 = vpop.f32.mrb[12].mxu0  ;;  %v2426_v10 = vpop.f32.mrb[12].mxu1 }
 0x14c   : > { %v3027_v11 = vadd.f32 %v2378_v9, %v2952_v24  ;;  %v3030_v12 = vadd.f32 %v2426_v10, %v2952_v24  ;;  %v421_v13 = vpop.f32.mrb[13].mxu0  ;;  %v581_v14 = vpop.f32.mrb[13].mxu1 }
 0x14d   : > { %v3033_v15 = vadd.f32 %v2952_v24, %v421_v13  ;;  %v3036_v16 = vadd.f32 %v2952_v24, %v581_v14 }
 0x14e   : > { %4921 = vst [vmem:[#allocation33_spill] sm:$0xff] %v3027_v11  ;;  %4922 = vst [vmem:[#allocation34_spill] sm:$0xff] %v3030_v12 }
 0x14f   : > { %4923 = vst [vmem:[#allocation35_spill] sm:$0xff] %v3033_v15  ;;  %4924 = vst [vmem:[#allocation36_spill] sm:$0xff] %v3036_v16  ;;  %v2381_v17 = vpop.f32.mrb[14].mxu0  ;;  %v2429_v18 = vpop.f32.mrb[14].mxu1 }
 0x150   : > { %v3039_v19 = vadd.f32 %v2381_v17, %v2952_v24  ;;  %v3042_v20 = vadd.f32 %v2429_v18, %v2952_v24  ;;  %v431_v21 = vpop.f32.mrb[15].mxu0  ;;  %v591_v22 = vpop.f32.mrb[15].mxu1 }
 0x151   : > { %v3045_v23 = vadd.f32 %v2952_v24, %v431_v21  ;;  %v3048_v25 = vadd.f32 %v2952_v24, %v591_v22 }
 0x152   : > { %4925 = vst [vmem:[#allocation37_spill] sm:$0xff] %v3039_v19  ;;  %4926 = vst [vmem:[#allocation38_spill] sm:$0xff] %v3042_v20 }
 0x153   : > { %4927 = vst [vmem:[#allocation39_spill] sm:$0xff] %v3045_v23  ;;  %4928 = vst [vmem:[#allocation40_spill] sm:$0xff] %v3048_v25  ;;  %v2384_v26 = vpop.f32.mrb[16].mxu0  ;;  %v2432_v29 = vpop.f32.mrb[16].mxu1 }
 0x154   : > { %v3051_v30 = vadd.f32 %v2384_v26, %v2952_v24  ;;  %v3054_v33 = vadd.f32 %v2432_v29, %v2952_v24  ;;  %v441_v34 = vpop.f32.mrb[17].mxu0  ;;  %v601_v37 = vpop.f32.mrb[17].mxu1 }
 0x155   : > { %v3057_v38 = vadd.f32 %v2952_v24, %v441_v34  ;;  %v3060_v41 = vadd.f32 %v2952_v24, %v601_v37 }
 0x156   : > { %4929 = vst [vmem:[#allocation41_spill] sm:$0xff] %v3051_v30  ;;  %4930 = vst [vmem:[#allocation42_spill] sm:$0xff] %v3054_v33 }
 0x157   : > { %4931 = vst [vmem:[#allocation43_spill] sm:$0xff] %v3057_v38  ;;  %4932 = vst [vmem:[#allocation44_spill] sm:$0xff] %v3060_v41  ;;  %v2387_v42 = vpop.f32.mrb[18].mxu0  ;;  %v2435_v45 = vpop.f32.mrb[18].mxu1 }
 0x158   : > { %v3063_v46 = vadd.f32 %v2387_v42, %v2952_v24  ;;  %v3066_v49 = vadd.f32 %v2435_v45, %v2952_v24  ;;  %v451_v50 = vpop.f32.mrb[19].mxu0  ;;  %v611_v53 = vpop.f32.mrb[19].mxu1 }
 0x159   : > { %v3069_v54 = vadd.f32 %v2952_v24, %v451_v50  ;;  %v3072_v57 = vadd.f32 %v2952_v24, %v611_v53 }
 0x15a   : > { %4933 = vst [vmem:[#allocation45_spill] sm:$0xff] %v3063_v46  ;;  %4934 = vst [vmem:[#allocation46_spill] sm:$0xff] %v3066_v49 }
 0x15b   : > { %4935 = vst [vmem:[#allocation47_spill] sm:$0xff] %v3069_v54  ;;  %4936 = vst [vmem:[#allocation48_spill] sm:$0xff] %v3072_v57  ;;  %v2390_v58 = vpop.f32.mrb[20].mxu0  ;;  %v2438_v61 = vpop.f32.mrb[20].mxu1 }
 0x15c   : > { %v3075_v62 = vadd.f32 %v2390_v58, %v2952_v24  ;;  %v3078_v1 = vadd.f32 %v2438_v61, %v2952_v24  ;;  %v461_v2 = vpop.f32.mrb[21].mxu0  ;;  %v621_v5 = vpop.f32.mrb[21].mxu1 }
 0x15d   : > { %v3081_v6 = vadd.f32 %v2952_v24, %v461_v2  ;;  %v3084_v9 = vadd.f32 %v2952_v24, %v621_v5 }
 0x15e   : > { %4937 = vst [vmem:[#allocation49_spill] sm:$0xff] %v3075_v62  ;;  %4938 = vst [vmem:[#allocation50_spill] sm:$0xff] %v3078_v1 }
 0x15f   : > { %4939 = vst [vmem:[#allocation51_spill] sm:$0xff] %v3081_v6  ;;  %4940 = vst [vmem:[#allocation52_spill] sm:$0xff] %v3084_v9  ;;  %v2393_v10 = vpop.f32.mrb[22].mxu0  ;;  %v2441_v13 = vpop.f32.mrb[22].mxu1 }
 0x160   : > { %v3087_v14 = vadd.f32 %v2393_v10, %v2952_v24  ;;  %v3090_v17 = vadd.f32 %v2441_v13, %v2952_v24  ;;  %v471_v18 = vpop.f32.mrb[23].mxu0  ;;  %v631_v21 = vpop.f32.mrb[23].mxu1 }
 0x161   : > { %v3093_v22 = vadd.f32 %v2952_v24, %v471_v18  ;;  %v3096_v26 = vadd.f32 %v2952_v24, %v631_v21 }
 0x162   : > { %4941 = vst [vmem:[#allocation53_spill] sm:$0xff] %v3087_v14  ;;  %4942 = vst [vmem:[#allocation54_spill] sm:$0xff] %v3090_v17 }
 0x163   : > { %4943 = vst [vmem:[#allocation55_spill] sm:$0xff] %v3093_v22  ;;  %4944 = vst [vmem:[#allocation56_spill] sm:$0xff] %v3096_v26  ;;  %v2396_v29 = vpop.f32.mrb[24].mxu0  ;;  %v2444_v34 = vpop.f32.mrb[24].mxu1 }
 0x164   : > { %v3099_v37 = vadd.f32 %v2396_v29, %v2952_v24  ;;  %v3102_v42 = vadd.f32 %v2444_v34, %v2952_v24  ;;  %v481_v45 = vpop.f32.mrb[25].mxu0  ;;  %v641_v50 = vpop.f32.mrb[25].mxu1 }
 0x165   : > { %v3105_v53 = vadd.f32 %v2952_v24, %v481_v45  ;;  %v3108_v58 = vadd.f32 %v2952_v24, %v641_v50 }
 0x166   : > { %4945 = vst [vmem:[#allocation57_spill] sm:$0xff] %v3099_v37  ;;  %4946 = vst [vmem:[#allocation58_spill] sm:$0xff] %v3102_v42 }
 0x167   : > { %4947 = vst [vmem:[#allocation59_spill] sm:$0xff] %v3105_v53  ;;  %4948 = vst [vmem:[#allocation60_spill] sm:$0xff] %v3108_v58  ;;  %v2399_v61 = vpop.f32.mrb[26].mxu0  ;;  %v2447_v2 = vpop.f32.mrb[26].mxu1 }
 0x168   : > { %v3111_v5 = vadd.f32 %v2399_v61, %v2952_v24  ;;  %v3114_v10 = vadd.f32 %v2447_v2, %v2952_v24  ;;  %v491_v13 = vpop.f32.mrb[27].mxu0  ;;  %v651_v18 = vpop.f32.mrb[27].mxu1 }
 0x169   : > { %v3117_v21 = vadd.f32 %v2952_v24, %v491_v13  ;;  %v3120_v29 = vadd.f32 %v2952_v24, %v651_v18 }
 0x16a   : > { %4949 = vst [vmem:[#allocation61_spill] sm:$0xff] %v3111_v5  ;;  %4950 = vst [vmem:[#allocation62_spill] sm:$0xff] %v3114_v10 }
 0x16b   : > { %4951 = vst [vmem:[#allocation63_spill] sm:$0xff] %v3117_v21  ;;  %4952 = vst [vmem:[#allocation64_spill] sm:$0xff] %v3120_v29  ;;  %v2402_v34 = vpop.f32.mrb[28].mxu0  ;;  %v2450_v45 = vpop.f32.mrb[28].mxu1 }
 0x16c   : > { %v3123_v50 = vadd.f32 %v2402_v34, %v2952_v24  ;;  %v3126_v61 = vadd.f32 %v2450_v45, %v2952_v24  ;;  %v501_v42 = vpop.f32.mrb[29].mxu0  ;;  %v661_v2 = vpop.f32.mrb[29].mxu1 }
 0x16d   : > { %v3129_v10 = vadd.f32 %v2952_v24, %v501_v42  ;;  %v3132_v13 = vadd.f32 %v2952_v24, %v661_v2  ;;  %683 = sbr.rel (%p2238_p8) target bundleno = 372 (0x174), region = 40 }
 0x16e   : > { %4953 = vst [vmem:[#allocation65_spill] sm:$0xff] %v3123_v50  ;;  %4954 = vst [vmem:[#allocation66_spill] sm:$0xff] %v3126_v61 }
 0x16f   : > { %4955 = vst [vmem:[#allocation67_spill] sm:$0xff] %v3129_v10  ;;  %4956 = vst [vmem:[#allocation68_spill] sm:$0xff] %v3132_v13  ;;  %v2405_v58 = vpop.f32.mrb[30].mxu0  ;;  %v2453_v18 = vpop.f32.mrb[30].mxu1 }
 0x170   : > { %v3135_v29 = vadd.f32 %v2405_v58, %v2952_v24  ;;  %v3138_v17 = vadd.f32 %v2453_v18, %v2952_v24  ;;  %v511_v34 = vpop.f32.mrb[31].mxu0  ;;  %v671_v26 = vpop.f32.mrb[31].mxu1 }
 0x171   : > { %v3141_v45 = vadd.f32 %v2952_v24, %v511_v34  ;;  %v3144_v1 = vadd.f32 %v2952_v24, %v671_v26 }
 0x172   : > { %4957 = vst [vmem:[#allocation69_spill] sm:$0xff] %v3135_v29  ;;  %4958 = vst [vmem:[#allocation70_spill] sm:$0xff] %v3138_v17 }
 0x173   : > { %4959 = vst [vmem:[#allocation71_spill] sm:$0xff] %v3141_v45  ;;  %4960 = vst [vmem:[#allocation72_spill] sm:$0xff] %v3144_v1 }
 0x174 PF: > { %v3160_v24 = vadd.f32 %v2973_v39, %v2955_v27  ;;  %v3164_v26 = vadd.f32 %v2955_v27, %v2961_v31  ;;  %v3168_v42 = vadd.f32 %v2967_v35, %v2973_v39  ;;  %v698_v58 = vld [vmem:[#allocation2 + $0x30] sm:$0xff]  ;;  %vm699_vm1 = vcmask 261120   ;;  %v3170_v2 = vld [vmem:[#allocation2 + $0x28] sm:$0xff]  ;;  %v3172_v18 = vld [vmem:[#allocation2 + $0x20] sm:$0xff]  ;;  %s2688_s18 = smov 32   ;;  %s2689_s28 = smov 64  }
 0x175   : > { %4961 = vst [vmem:[#allocation73_spill] sm:$0xff] %v3172_v18  ;;  %v3175_v34 = vadd.f32 %v698_v58, %v2961_v31  ;;  %706 = vst.msk [vmem:[#allocation2 + $0x30] sm:$0xff] %vm699_vm1, %v3138_v17  ;;  %v718_v17 = vadd.f32 %v2979_v43, %v2985_v47  ;;  %s2690_s29 = smov 96   ;;  %vm1933_vm2 = vcmask 523264   ;;  %vm1998_vm3 = vcmask 785408   ;;  %s2245_s24 = sshll.u32 %s2675_s15, 13 }
 0x176   : > { %705 = vst.msk [vmem:[#allocation2 + $0x28] sm:$0xff] %vm699_vm1, %v3144_v1  ;;  %704 = vst.msk [vmem:[#allocation2 + $0x20] sm:$0xff] %vm699_vm1, %v3126_v61  ;;  %v779_v39 = vmul.f32 0.5, %v3160_v24  ;;  %v778_v27 = vmul.f32 0.5, %v3164_v26  ;;  %v780_v31 = vmul.f32 0.5, %v3168_v42  ;;  %v717_v1 = vadd.f32 %v2985_v47, %v2967_v35  ;;  %s2142_s30 = sshll.u32 %s3148_s21, 4  ;;  %s4676_s5 = scalar_lea.hbm %s4737_s3, %s2245_s24  ;;  %s4678_s30 = int_to_ptr.vmem [resolvable:$true] %s2142_s30 }
 0x177   : > { %v777_v18 = vmul.f32 0.5, %v3175_v34  ;;  %v782_v61 = vmul.f32 0.5, %v718_v17  ;;  %v722_v47 = vadd.f32 %v3003_v59, %v3009_v63  ;;  %s2128_s7 = scalar_lea.sflag [#allocation5], %s2825_s11  ;;  %s2601_s19 = scalar_lea.vmem %s4678_s30, 8192 }
 0x178   : > { %1169 = vrot.lane.b32.xlu1 %v779_v39, %s2688_s18  ;;  %1167 = vrot.lane.b32.xlu0 %v778_v27, %s2688_s18  ;;  %v781_v13 = vmul.f32 0.5, %v717_v1  ;;  %v720_v39 = vadd.f32 %v2991_v51, %v2997_v55  ;;  %v719_v27 = vadd.f32 %v2997_v55, %v2979_v43  ;;  %v724_v55 = vadd.f32 %v3015_v3, %v3021_v7  ;;  %p2602_p9 = scmp.ne.s32.totalorder %s4678_s30, %s2601_s19  ;;  %p5292_p11 = scmp.ne.s32.totalorder %s4893_s25, 0 }
 0x179   : > { %s2691_s6 = smov [#allocation6]  }
 0x17a   : > { %v784_v9 = vmul.f32 0.5, %v720_v39  ;;  %v783_v49 = vmul.f32 0.5, %v719_v27  ;;  %p2603_p13 = pnand %p2602_p9, %p5292_p11  ;;  %s2605_s8 = sshll.u32 %s2691_s6, 4  ;;  %s2606_s8 = int_to_ptr.vmem [resolvable:$false] %s2605_s8 }
 0x17b   : > { %s2607_s9 = scalar_lea.vmem %s2606_s8, 16384  ;;  %p2608_p12 = scmp.lt.s32.totalorder %s4678_s30, %s2606_s8 }
 0x17c   : > { %1171 = vrot.lane.b32.xlu1 %v780_v31, %s2688_s18  ;;  %1165 = vrot.lane.b32.xlu0 %v777_v18, %s2688_s18  ;;  %v721_v31 = vadd.f32 %v3009_v63, %v2991_v51  ;;  %v786_v18 = vmul.f32 0.5, %v722_v47  ;;  %v726_v63 = vadd.f32 %v3027_v11, %v3033_v15  ;;  %p2604_p10 = pneg %p2603_p13  ;;  %p2609_p1 = scmp.lt.s32.totalorder %s2607_s9, %s2601_s19 }
 0x17e   : > { %v785_v35 = vmul.f32 0.5, %v721_v31  ;;  %p2610_p3 = por %p2609_p1, %p2608_p12 }
 0x180   : > { %1175 = vrot.lane.b32.xlu1 %v782_v61, %s2688_s18  ;;  %1173 = vrot.lane.b32.xlu0 %v781_v13, %s2688_s18  ;;  %v723_v61 = vadd.f32 %v3021_v7, %v3003_v59  ;;  %v788_v13 = vmul.f32 0.5, %v724_v55  ;;  %v728_v7 = vadd.f32 %v3039_v19, %v3045_v23  ;;  %p2611_p4 = pnand %p2610_p3, %p2604_p10 }
 0x182   : > { %v787_v43 = vmul.f32 0.5, %v723_v61 }
 0x184   : > { %1179 = vrot.lane.b32.xlu1 %v784_v9, %s2688_s18  ;;  %1177 = vrot.lane.b32.xlu0 %v783_v49, %s2688_s18  ;;  %v725_v49 = vadd.f32 %v3033_v15, %v3015_v3  ;;  %v790_v9 = vmul.f32 0.5, %v726_v63  ;;  %v730_v15 = vadd.f32 %v3051_v30, %v3057_v38  ;;  %v3240_v3 = vadd.f32 %v3168_v42, %v3164_v26 }
 0x186   : > { %v789_v51 = vmul.f32 0.5, %v725_v49  ;;  %4962 = vst [vmem:[#allocation74_spill] sm:$0xff] %v3240_v3  ;;  %v734_v3 = vadd.f32 %v3075_v62, %v3081_v6 }
 0x188   : > { %1183 = vrot.lane.b32.xlu1 %v786_v18, %s2688_s18  ;;  %1181 = vrot.lane.b32.xlu0 %v785_v35, %s2688_s18  ;;  %v727_v35 = vadd.f32 %v3045_v23, %v3027_v11  ;;  %v792_v18 = vmul.f32 0.5, %v728_v7  ;;  %v794_v23 = vmul.f32 0.5, %v730_v15 }
 0x18a   : > { %v791_v59 = vmul.f32 0.5, %v727_v35 }
 0x18c   : > { %1187 = vrot.lane.b32.xlu1 %v788_v13, %s2688_s18  ;;  %1185 = vrot.lane.b32.xlu0 %v787_v43, %s2688_s18  ;;  %v729_v43 = vadd.f32 %v3057_v38, %v3039_v19  ;;  %v732_v13 = vadd.f32 %v3063_v46, %v3069_v54  ;;  %v3244_v38 = vadd.f32 %v3160_v24, %v3175_v34 }
 0x18d   : > { %v3252_v19 = vadd.f32 %v720_v39, %v718_v17 }
 0x18e   : > { %v793_v11 = vmul.f32 0.5, %v729_v43  ;;  %4963 = vst [vmem:[#allocation75_spill] sm:$0xff] %v3244_v38 }
 0x18f   : > { %4966 = vst [vmem:[#allocation78_spill] sm:$0xff] %v3252_v19  ;;  %v736_v19 = vadd.f32 %v3087_v14, %v3093_v22 }
 0x190   : > { %1191 = vrot.lane.b32.xlu1 %v790_v9, %s2688_s18  ;;  %1189 = vrot.lane.b32.xlu0 %v789_v51, %s2688_s18  ;;  %v731_v51 = vadd.f32 %v3069_v54, %v3051_v30  ;;  %v3236_v9 = vadd.f32 %v698_v58, %v3170_v2  ;;  %v3254_v54 = vadd.f32 %v719_v27, %v717_v1  ;;  %v796_v58 = vmul.f32 0.5, %v732_v13 }
 0x192   : > { %4967 = vst [vmem:[#allocation79_spill] sm:$0xff] %v3254_v54  ;;  %v795_v30 = vmul.f32 0.5, %v731_v51  ;;  %v3270_v54 = vadd.f32 %v726_v63, %v724_v55 }
 0x194   : > { %1195 = vrot.lane.b32.xlu1 %v792_v18, %s2688_s18  ;;  %1193 = vrot.lane.b32.xlu0 %v791_v59, %s2688_s18  ;;  %v3247_v18 = vadd.f32 %v718_v17, %v3168_v42  ;;  %v3250_v59 = vadd.f32 %v717_v1, %v3160_v24  ;;  %v733_v42 = vadd.f32 %v3081_v6, %v3063_v46 }
 0x195   : > { %v3264_v24 = vadd.f32 %v721_v31, %v719_v27  ;;  %v3266_v17 = vadd.f32 %v724_v55, %v722_v47  ;;  %v3268_v1 = vadd.f32 %v723_v61, %v721_v31  ;;  %v735_v27 = vadd.f32 %v3093_v22, %v3075_v62 }
 0x196   : > { %4964 = vst [vmem:[#allocation76_spill] sm:$0xff] %v3247_v18  ;;  %4965 = vst [vmem:[#allocation77_spill] sm:$0xff] %v3250_v59  ;;  %v3262_v18 = vadd.f32 %v722_v47, %v720_v39  ;;  %v3278_v59 = vadd.f32 %v727_v35, %v725_v49  ;;  %v798_v39 = vmul.f32 0.5, %v734_v3  ;;  %v797_v47 = vmul.f32 0.5, %v733_v42 }
 0x197   : > { %v3284_v55 = vadd.f32 %v730_v15, %v728_v7  ;;  %v3286_v31 = vadd.f32 %v729_v43, %v727_v35  ;;  %v3292_v6 = vadd.f32 %v734_v3, %v732_v13  ;;  %v737_v35 = vadd.f32 %v3105_v53, %v3087_v14 }
 0x198   : > { %1199 = vrot.lane.b32.xlu1 %v794_v23, %s2688_s18  ;;  %1197 = vrot.lane.b32.xlu0 %v793_v11, %s2688_s18  ;;  %v3272_v23 = vadd.f32 %v725_v49, %v723_v61  ;;  %v3274_v11 = vadd.f32 %v728_v7, %v726_v63  ;;  %v3288_v63 = vadd.f32 %v732_v13, %v730_v15 }
 0x199   : > { %v3290_v61 = vadd.f32 %v731_v51, %v729_v43  ;;  %v3294_v49 = vadd.f32 %v733_v42, %v731_v51  ;;  %v738_v7 = vadd.f32 %v3099_v37, %v3105_v53  ;;  %v3302_v15 = vadd.f32 %v736_v19, %v734_v3 }
 0x19a   : > { %v3304_v43 = vadd.f32 %v735_v27, %v733_v42  ;;  %v740_v13 = vadd.f32 %v3111_v5, %v3117_v21  ;;  %v739_v51 = vadd.f32 %v3117_v21, %v3099_v37  ;;  %v3314_v62 = vadd.f32 %v737_v35, %v735_v27 }
 0x19b   : > { %v3312_v22 = vadd.f32 %v738_v7, %v736_v19  ;;  %v742_v3 = vadd.f32 %v3123_v50, %v3129_v10  ;;  %v741_v42 = vadd.f32 %v3129_v10, %v3111_v5 }
 0x19c   : > { %1203 = vrot.lane.b32.xlu1 %v796_v58, %s2688_s18  ;;  %1201 = vrot.lane.b32.xlu0 %v795_v30, %s2688_s18  ;;  %v800_v58 = vmul.f32 0.5, %v736_v19  ;;  %v799_v30 = vmul.f32 0.5, %v735_v27  ;;  %v804_v21 = vmul.f32 0.5, %v740_v13  ;;  %v3322_v53 = vadd.f32 %v740_v13, %v738_v7 }
 0x19d   : > { %v744_v19 = vadd.f32 %v3135_v29, %v3141_v45  ;;  %v743_v27 = vadd.f32 %v3141_v45, %v3123_v50  ;;  %v806_v10 = vmul.f32 0.5, %v742_v3  ;;  %v3332_v5 = vadd.f32 %v742_v3, %v740_v13 }
 0x19e   : > { %v748_v13 = vadd.f32 %v2970_v36, %v2976_v40 }
 0x19f   : > { %v807_v37 = vmul.f32 0.5, %v743_v27  ;;  %v3342_v45 = vadd.f32 %v744_v19, %v742_v3  ;;  %v750_v3 = vadd.f32 %v2982_v44, %v2988_v48 }
 0x1a0   : > { %1207 = vrot.lane.b32.xlu1 %v798_v39, %s2688_s18  ;;  %1205 = vrot.lane.b32.xlu0 %v797_v47, %s2688_s18  ;;  %v802_v39 = vmul.f32 0.5, %v738_v7  ;;  %v801_v47 = vmul.f32 0.5, %v737_v35  ;;  %v808_v7 = vmul.f32 0.5, %v744_v19 }
 0x1a4   : > { %1211 = vrot.lane.b32.xlu1 %v800_v58, %s2688_s18  ;;  %1209 = vrot.lane.b32.xlu0 %v799_v30, %s2688_s18  ;;  %v803_v58 = vmul.f32 0.5, %v739_v51  ;;  %v3324_v30 = vadd.f32 %v739_v51, %v737_v35  ;;  %v746_v35 = vadd.f32 %v2958_v28, %v2964_v32 }
 0x1a6   : > { %v3352_v50 = vadd.f32 %v746_v35, %v744_v19  ;;  %v752_v19 = vadd.f32 %v2994_v52, %v3000_v56 }
 0x1a8   : > { %1215 = vrot.lane.b32.xlu1 %v802_v39, %s2688_s18  ;;  %1213 = vrot.lane.b32.xlu0 %v801_v47, %s2688_s18  ;;  %v805_v39 = vmul.f32 0.5, %v741_v42  ;;  %v3334_v47 = vadd.f32 %v741_v42, %v739_v51  ;;  %v747_v51 = vadd.f32 %v2976_v40, %v2958_v28  ;;  %v812_v40 = vmul.f32 0.5, %v748_v13 }
 0x1ac   : > { %1219 = vrot.lane.b32.xlu1 %v804_v21, %s2688_s18  ;;  %1217 = vrot.lane.b32.xlu0 %v803_v58, %s2688_s18  ;;  %v745_v21 = vadd.f32 %v2964_v32, %v3135_v29  ;;  %v3344_v58 = vadd.f32 %v743_v27, %v741_v42  ;;  %v749_v42 = vadd.f32 %v2988_v48, %v2970_v36  ;;  %v814_v48 = vmul.f32 0.5, %v750_v3 }
 0x1ad   : > { %v3362_v32 = vadd.f32 %v748_v13, %v746_v35  ;;  %v3372_v36 = vadd.f32 %v750_v3, %v748_v13 }
 0x1ae   : > { %v3354_v14 = vadd.f32 %v745_v21, %v743_v27  ;;  %v751_v27 = vadd.f32 %v3000_v56, %v2982_v44  ;;  %v3396_v44 = vadd.f32 %v3024_v8, %v3006_v60 }
 0x1b0   : > { %1223 = vrot.lane.b32.xlu1 %v806_v10, %s2688_s18  ;;  %1221 = vrot.lane.b32.xlu0 %v805_v39, %s2688_s18  ;;  %v810_v10 = vmul.f32 0.5, %v746_v35  ;;  %v809_v39 = vmul.f32 0.5, %v745_v21  ;;  %v816_v35 = vmul.f32 0.5, %v752_v19  ;;  %v815_v56 = vmul.f32 0.5, %v751_v27 }
 0x1b1   : > { %v3388_v13 = vadd.f32 %v751_v27, %v749_v42 }
 0x1b4   : > { %1227 = vrot.lane.b32.xlu1 %v808_v7, %s2688_s18  ;;  %1225 = vrot.lane.b32.xlu0 %v807_v37, %s2688_s18  ;;  %v811_v7 = vmul.f32 0.5, %v747_v51  ;;  %v3364_v37 = vadd.f32 %v747_v51, %v745_v21  ;;  %v3378_v21 = vadd.f32 %v3006_v60, %v3012_v0  ;;  %v3454_v60 = vadd.f32 %v3072_v57, %v3054_v33 }
 0x1b6   : > { %4974 = vst [vmem:[#allocation85_spill] sm:$0xff] %v3454_v60 }
 0x1b8   : > { %1231 = vrot.lane.b32.xlu1 %v810_v10, %s2688_s18  ;;  %1229 = vrot.lane.b32.xlu0 %v809_v39, %s2688_s18  ;;  %v813_v10 = vmul.f32 0.5, %v749_v42  ;;  %v3374_v39 = vadd.f32 %v749_v42, %v747_v51  ;;  %v3392_v51 = vadd.f32 %v3018_v4, %v3024_v8 }
 0x1ba   : > { %v820_v8 = vmul.f32 0.5, %v3392_v51 }
 0x1bc   : > { %1235 = vrot.lane.b32.xlu1 %v812_v40, %s2688_s18  ;;  %1233 = vrot.lane.b32.xlu0 %v811_v7, %s2688_s18  ;;  %v3384_v40 = vadd.f32 %v3012_v0, %v2994_v52  ;;  %v3386_v7 = vadd.f32 %v752_v19, %v750_v3  ;;  %v3403_v3 = vadd.f32 %v3378_v21, %v752_v19 }
 0x1bd   : > { %v3418_v0 = vadd.f32 %v3036_v16, %v3018_v4  ;;  %v3442_v4 = vadd.f32 %v3060_v41, %v3042_v20 }
 0x1be   : > { %v3406_v42 = vadd.f32 %v3384_v40, %v751_v27 }
 0x1bf   : > { %v821_v27 = vmul.f32 0.5, %v3418_v0  ;;  %4971 = vst [vmem:[#allocation83_spill] sm:$0xff] %v3442_v4 }
 0x1c0   : > { %1239 = vrot.lane.b32.xlu1 %v814_v48, %s2688_s18  ;;  %1237 = vrot.lane.b32.xlu0 %v813_v10, %s2688_s18  ;;  %v818_v48 = vmul.f32 0.5, %v3378_v21  ;;  %v817_v10 = vmul.f32 0.5, %v3384_v40 }
 0x1c4   : > { %1243 = vrot.lane.b32.xlu1 %v816_v35, %s2688_s18  ;;  %1241 = vrot.lane.b32.xlu0 %v815_v56, %s2688_s18  ;;  %v819_v35 = vmul.f32 0.5, %v3396_v44  ;;  %v3414_v56 = vadd.f32 %v3030_v12, %v3036_v16  ;;  %v3438_v16 = vadd.f32 %v3054_v33, %v3060_v41  ;;  %v4975_v41 = vld [vmem:[#allocation52_spill] sm:$0xff]  ;;  %v4980_v33 = vld [vmem:[#allocation54_spill] sm:$0xff] }
 0x1c6   : > { %v822_v19 = vmul.f32 0.5, %v3414_v56  ;;  %4970 = vst [vmem:[#allocation82_spill] sm:$0xff] %v3438_v16 }
 0x1c8   : > { %1247 = vrot.lane.b32.xlu1 %v818_v48, %s2688_s18  ;;  %1245 = vrot.lane.b32.xlu0 %v817_v10, %s2688_s18  ;;  %v3426_v48 = vadd.f32 %v3042_v20, %v3048_v25  ;;  %v3430_v10 = vadd.f32 %v3048_v25, %v3030_v12  ;;  %v4972_v25 = vld [vmem:[#allocation46_spill] sm:$0xff] }
 0x1c9   : > { %v3450_v12 = vadd.f32 %v4972_v25, %v3072_v57  ;;  %v4976_v20 = vld [vmem:[#allocation50_spill] sm:$0xff]  ;;  %v3466_v28 = vadd.f32 %v4975_v41, %v4972_v25  ;;  %v4979_v57 = vld [vmem:[#allocation56_spill] sm:$0xff] }
 0x1ca   : > { %4968 = vst [vmem:[#allocation80_spill] sm:$0xff] %v3426_v48  ;;  %4969 = vst [vmem:[#allocation81_spill] sm:$0xff] %v3430_v10  ;;  %v3462_v52 = vadd.f32 %v4976_v20, %v4975_v41  ;;  %v3474_v29 = vadd.f32 %v4980_v33, %v4979_v57  ;;  %v3478_v46 = vadd.f32 %v4979_v57, %v4976_v20  ;;  %v4983_v41 = vld [vmem:[#allocation60_spill] sm:$0xff]  ;;  %v4984_v25 = vld [vmem:[#allocation58_spill] sm:$0xff] }
 0x1cb   : > { %4973 = vst [vmem:[#allocation84_spill] sm:$0xff] %v3450_v12  ;;  %4978 = vst [vmem:[#allocation87_spill] sm:$0xff] %v3466_v28  ;;  %v4987_v57 = vld [vmem:[#allocation64_spill] sm:$0xff]  ;;  %v4988_v20 = vld [vmem:[#allocation62_spill] sm:$0xff] }
 0x1cc   : > { %1251 = vrot.lane.b32.xlu1 %v820_v8, %s2688_s18  ;;  %1249 = vrot.lane.b32.xlu0 %v819_v35, %s2688_s18  ;;  %v824_v8 = vmul.f32 0.5, %v3426_v48  ;;  %v823_v35 = vmul.f32 0.5, %v3430_v10  ;;  %4977 = vst [vmem:[#allocation86_spill] sm:$0xff] %v3462_v52  ;;  %4981 = vst [vmem:[#allocation88_spill] sm:$0xff] %v3474_v29 }
 0x1cd   : > { %4982 = vst [vmem:[#allocation89_spill] sm:$0xff] %v3478_v46 }
 0x1d0   : > { %1255 = vrot.lane.b32.xlu1 %v822_v19, %s2688_s18  ;;  %1253 = vrot.lane.b32.xlu0 %v821_v27, %s2688_s18  ;;  %v826_v19 = vmul.f32 0.5, %v3438_v16  ;;  %v825_v27 = vmul.f32 0.5, %v3442_v4  ;;  %v4997_v4 = vld [vmem:[#allocation72_spill] sm:$0xff] }
 0x1d4   : > { %1259 = vrot.lane.b32.xlu1 %v824_v8, %s2688_s18  ;;  %1257 = vrot.lane.b32.xlu0 %v823_v35, %s2688_s18  ;;  %v828_v8 = vmul.f32 0.5, %v3450_v12  ;;  %v827_v35 = vmul.f32 0.5, %v3454_v60 }
 0x1d8   : > { %1263 = vrot.lane.b32.xlu1 %v826_v19, %s2688_s18  ;;  %1261 = vrot.lane.b32.xlu0 %v825_v27, %s2688_s18  ;;  %v830_v19 = vmul.f32 0.5, %v3462_v52  ;;  %v829_v27 = vmul.f32 0.5, %v3466_v28  ;;  %v3486_v52 = vadd.f32 %v4984_v25, %v4983_v41  ;;  %v3490_v28 = vadd.f32 %v4983_v41, %v4980_v33  ;;  %v4991_v41 = vld [vmem:[#allocation68_spill] sm:$0xff]  ;;  %v4992_v33 = vld [vmem:[#allocation66_spill] sm:$0xff] }
 0x1da   : > { %4985 = vst [vmem:[#allocation90_spill] sm:$0xff] %v3486_v52  ;;  %4986 = vst [vmem:[#allocation91_spill] sm:$0xff] %v3490_v28 }
 0x1dc   : > { %1267 = vrot.lane.b32.xlu1 %v828_v8, %s2688_s18  ;;  %1265 = vrot.lane.b32.xlu0 %v827_v35, %s2688_s18  ;;  %v832_v8 = vmul.f32 0.5, %v3474_v29  ;;  %v831_v35 = vmul.f32 0.5, %v3478_v46  ;;  %v3498_v29 = vadd.f32 %v4988_v20, %v4987_v57  ;;  %v3502_v46 = vadd.f32 %v4987_v57, %v4984_v25 }
 0x1de   : > { %4989 = vst [vmem:[#allocation92_spill] sm:$0xff] %v3498_v29  ;;  %4990 = vst [vmem:[#allocation93_spill] sm:$0xff] %v3502_v46 }
 0x1e0   : > { %1271 = vrot.lane.b32.xlu1 %v830_v19, %s2688_s18  ;;  %1269 = vrot.lane.b32.xlu0 %v829_v27, %s2688_s18  ;;  %v834_v19 = vmul.f32 0.5, %v3486_v52  ;;  %v833_v27 = vmul.f32 0.5, %v3490_v28  ;;  %v3510_v52 = vadd.f32 %v4992_v33, %v4991_v41  ;;  %v3514_v28 = vadd.f32 %v4991_v41, %v4988_v20 }
 0x1e2   : > { %4993 = vst [vmem:[#allocation94_spill] sm:$0xff] %v3510_v52  ;;  %4994 = vst [vmem:[#allocation95_spill] sm:$0xff] %v3514_v28  ;;  %v837_v10 = vmul.f32 0.5, %v3514_v28  ;;  %v694_v28 = vld [vmem:[#allocation2 + $0x10] sm:$0xff] }
 0x1e3   : > { %702 = vst.msk [vmem:[#allocation2 + $0x10] sm:$0xff] %vm699_vm1, %v4988_v20 }
 0x1e4   : > { %1275 = vrot.lane.b32.xlu1 %v832_v8, %s2688_s18  ;;  %1273 = vrot.lane.b32.xlu0 %v831_v35, %s2688_s18  ;;  %v836_v8 = vmul.f32 0.5, %v3498_v29  ;;  %v835_v35 = vmul.f32 0.5, %v3502_v46  ;;  %v838_v46 = vmul.f32 0.5, %v3510_v52  ;;  %v695_v52 = vld [vmem:[#allocation2 + $0x18] sm:$0xff] }
 0x1e5   : > { %703 = vst.msk [vmem:[#allocation2 + $0x18] sm:$0xff] %vm699_vm1, %v4991_v41 }
 0x1e8   : > { %1279 = vrot.lane.b32.xlu1 %v834_v19, %s2688_s18  ;;  %1277 = vrot.lane.b32.xlu0 %v833_v27, %s2688_s18  ;;  %v4998_v19 = vld [vmem:[#allocation70_spill] sm:$0xff]  ;;  %v4999_v27 = vld [vmem:[#allocation73_spill] sm:$0xff] }
 0x1e9   : > { %v3522_v16 = vadd.f32 %v4998_v19, %v4997_v4  ;;  %v3526_v29 = vadd.f32 %v3170_v2, %v4999_v27  ;;  %v3543_v2 = vadd.f32 %v3164_v26, %v3236_v9 }
 0x1ea   : > { %v3516_v60 = vpop.permute.xlu1 %1169  ;;  %v3518_v12 = vpop.permute.xlu0 %1167 }
 0x1eb   : > { %4995 = vst [vmem:[#allocation96_spill] sm:$0xff] %v3516_v60  ;;  %4996 = vst [vmem:[#allocation97_spill] sm:$0xff] %v3518_v12  ;;  %v3534_v60 = vadd.f32 %v4997_v4, %v4992_v33  ;;  %v840_v48 = vmul.f32 0.5, %v3522_v16  ;;  %v3557_v33 = vadd.f32 %v4999_v27, %v695_v52 }
 0x1ec   : > { %1283 = vrot.lane.b32.xlu1 %v836_v8, %s2688_s18  ;;  %1281 = vrot.lane.b32.xlu0 %v835_v35, %s2688_s18  ;;  %v3547_v8 = vadd.f32 %v3175_v34, %v3526_v29  ;;  %v693_v35 = vld [vmem:[#allocation2 + $0x8] sm:$0xff]  ;;  %v692_v34 = vld [vmem:[#allocation2] sm:$0xff] }
 0x1ed   : > { %v839_v4 = vmul.f32 0.5, %v3534_v60  ;;  %v708_v26 = vadd.f32 %v694_v28, %v693_v35  ;;  %701 = vst.msk [vmem:[#allocation2 + $0x8] sm:$0xff] %vm699_vm1, %v4987_v57  ;;  %700 = vst.msk [vmem:[#allocation2] sm:$0xff] %vm699_vm1, %v4984_v25  ;;  %v911_v57 = vmul.f32 0.25, %v3244_v38  ;;  %v5009_v25 = vld [vmem:[#allocation76_spill] sm:$0xff] }
 0x1ee   : > { %v3536_v12 = vpop.permute.xlu1 %1171  ;;  %v3538_v19 = vpop.permute.xlu0 %1165 }
 0x1ef   : > { %5000 = vst [vmem:[#allocation73_spill] sm:$0xff] %v3536_v12  ;;  %5001 = vst [vmem:[#allocation98_spill] sm:$0xff] %v3538_v19  ;;  %v3561_v12 = vadd.f32 %v695_v52, %v694_v28  ;;  %v3570_v41 = vadd.f32 %v3557_v33, %v708_v26  ;;  %v910_v28 = vmul.f32 0.25, %v3543_v2  ;;  %v909_v52 = vmul.f32 0.25, %v3547_v8  ;;  %v5006_v26 = vld [vmem:[#allocation74_spill] sm:$0xff]  ;;  %v5014_v19 = vld [vmem:[#allocation79_spill] sm:$0xff] }
 0x1f0   : > { %1287 = vrot.lane.b32.xlu1 %v838_v46, %s2688_s18  ;;  %1285 = vrot.lane.b32.xlu0 %v837_v10, %s2688_s18  ;;  %v707_v46 = vadd.f32 %v693_v35, %v692_v34 }
 0x1f2   : > { %v3565_v10 = vpop.permute.xlu1 %1175  ;;  %v3567_v20 = vpop.permute.xlu0 %1173  ;;  %v3573_v27 = vadd.f32 %v3561_v12, %v707_v46  ;;  %v912_v46 = vmul.f32 0.25, %v5006_v26 }
 0x1f3   : > { %5002 = vst [vmem:[#allocation99_spill] sm:$0xff] %v3565_v10  ;;  %5003 = vst [vmem:[#allocation100_spill] sm:$0xff] %v3567_v20 }
 0x1f4   : > { %1291 = vrot.lane.b32.xlu1 %v840_v48, %s2688_s18  ;;  %1289 = vrot.lane.b32.xlu0 %v839_v4, %s2688_s18 }
 0x1f6   : > { %v3579_v35 = vpop.permute.xlu1 %1179  ;;  %v3581_v34 = vpop.permute.xlu0 %1177 }
 0x1f7   : > { %5004 = vst [vmem:[#allocation101_spill] sm:$0xff] %v3579_v35  ;;  %5005 = vst [vmem:[#allocation102_spill] sm:$0xff] %v3581_v34  ;;  %v914_v35 = vmul.f32 0.25, %v5009_v25  ;;  %v5010_v34 = vld [vmem:[#allocation77_spill] sm:$0xff] }
 0x1f8   : > { %1423 = vrot.lane.b32.xlu1 %v910_v28, %s2689_s28  ;;  %1421 = vrot.lane.b32.xlu0 %v909_v52, %s2689_s28  ;;  %v913_v20 = vmul.f32 0.25, %v5010_v34  ;;  %v5013_v52 = vld [vmem:[#allocation78_spill] sm:$0xff] }
 0x1fa   : > { %v3587_v48 = vpop.permute.xlu1 %1183  ;;  %v3589_v4 = vpop.permute.xlu0 %1181 }
 0x1fb   : > { %5007 = vst [vmem:[#allocation74_spill] sm:$0xff] %v3587_v48  ;;  %5008 = vst [vmem:[#allocation103_spill] sm:$0xff] %v3589_v4  ;;  %v916_v48 = vmul.f32 0.25, %v5013_v52  ;;  %v915_v4 = vmul.f32 0.25, %v5014_v19 }
 0x1fc   : > { %1427 = vrot.lane.b32.xlu1 %v912_v46, %s2689_s28  ;;  %1425 = vrot.lane.b32.xlu0 %v911_v57, %s2689_s28  ;;  %v918_v57 = vmul.f32 0.25, %v3262_v18 }
 0x1fe   : > { %v3595_v10 = vpop.permute.xlu1 %1187  ;;  %v3597_v28 = vpop.permute.xlu0 %1185 }
 0x1ff   : > { %5011 = vst [vmem:[#allocation76_spill] sm:$0xff] %v3595_v10  ;;  %5012 = vst [vmem:[#allocation77_spill] sm:$0xff] %v3597_v28  ;;  %v917_v28 = vmul.f32 0.25, %v3264_v24 }
 0x200   : > { %1431 = vrot.lane.b32.xlu1 %v914_v35, %s2689_s28  ;;  %1429 = vrot.lane.b32.xlu0 %v913_v20, %s2689_s28  ;;  %v920_v20 = vmul.f32 0.25, %v3266_v17 }
 0x202   : > { %v3603_v38 = vpop.permute.xlu1 %1191  ;;  %v3605_v46 = vpop.permute.xlu0 %1189 }
 0x203   : > { %5015 = vst [vmem:[#allocation78_spill] sm:$0xff] %v3603_v38  ;;  %5016 = vst [vmem:[#allocation79_spill] sm:$0xff] %v3605_v46  ;;  %v919_v46 = vmul.f32 0.25, %v3268_v1 }
 0x204   : > { %1435 = vrot.lane.b32.xlu1 %v916_v48, %s2689_s28  ;;  %1433 = vrot.lane.b32.xlu0 %v915_v4, %s2689_s28  ;;  %v922_v4 = vmul.f32 0.25, %v3270_v54 }
 0x206   : > { %v3611_v10 = vpop.permute.xlu1 %1195  ;;  %v3613_v35 = vpop.permute.xlu0 %1193 }
 0x207   : > { %5017 = vst [vmem:[#allocation104_spill] sm:$0xff] %v3611_v10  ;;  %5018 = vst [vmem:[#allocation105_spill] sm:$0xff] %v3613_v35  ;;  %v921_v35 = vmul.f32 0.25, %v3272_v23 }
 0x208   : > { %1439 = vrot.lane.b32.xlu1 %v918_v57, %s2689_s28  ;;  %1437 = vrot.lane.b32.xlu0 %v917_v28, %s2689_s28  ;;  %v924_v28 = vmul.f32 0.25, %v3274_v11 }
 0x20a   : > { %v3619_v38 = vpop.permute.xlu1 %1199  ;;  %v3621_v48 = vpop.permute.xlu0 %1197 }
 0x20b   : > { %5019 = vst [vmem:[#allocation106_spill] sm:$0xff] %v3619_v38  ;;  %5020 = vst [vmem:[#allocation107_spill] sm:$0xff] %v3621_v48  ;;  %v923_v48 = vmul.f32 0.25, %v3278_v59 }
 0x20c   : > { %1443 = vrot.lane.b32.xlu1 %v920_v20, %s2689_s28  ;;  %1441 = vrot.lane.b32.xlu0 %v919_v46, %s2689_s28  ;;  %v926_v46 = vmul.f32 0.25, %v3284_v55 }
 0x20e   : > { %v3627_v10 = vpop.permute.xlu1 %1203  ;;  %v3629_v57 = vpop.permute.xlu0 %1201 }
 0x20f   : > { %5021 = vst [vmem:[#allocation108_spill] sm:$0xff] %v3627_v10  ;;  %5022 = vst [vmem:[#allocation109_spill] sm:$0xff] %v3629_v57  ;;  %v925_v57 = vmul.f32 0.25, %v3286_v31 }
 0x210   : > { %1447 = vrot.lane.b32.xlu1 %v922_v4, %s2689_s28  ;;  %1445 = vrot.lane.b32.xlu0 %v921_v35, %s2689_s28  ;;  %v928_v35 = vmul.f32 0.25, %v3288_v63 }
 0x212   : > { %v3635_v38 = vpop.permute.xlu1 %1207  ;;  %v3637_v20 = vpop.permute.xlu0 %1205 }
 0x213   : > { %5023 = vst [vmem:[#allocation110_spill] sm:$0xff] %v3635_v38  ;;  %5024 = vst [vmem:[#allocation111_spill] sm:$0xff] %v3637_v20  ;;  %v927_v20 = vmul.f32 0.25, %v3290_v61 }
 0x214   : > { %1451 = vrot.lane.b32.xlu1 %v924_v28, %s2689_s28  ;;  %1449 = vrot.lane.b32.xlu0 %v923_v48, %s2689_s28  ;;  %v930_v48 = vmul.f32 0.25, %v3292_v6 }
 0x216   : > { %v3643_v10 = vpop.permute.xlu1 %1211  ;;  %v3645_v4 = vpop.permute.xlu0 %1209 }
 0x217   : > { %5025 = vst [vmem:[#allocation112_spill] sm:$0xff] %v3643_v10  ;;  %5026 = vst [vmem:[#allocation113_spill] sm:$0xff] %v3645_v4  ;;  %v929_v4 = vmul.f32 0.25, %v3294_v49 }
 0x218   : > { %1455 = vrot.lane.b32.xlu1 %v926_v46, %s2689_s28  ;;  %1453 = vrot.lane.b32.xlu0 %v925_v57, %s2689_s28  ;;  %v932_v57 = vmul.f32 0.25, %v3302_v15 }
 0x21a   : > { %v3651_v38 = vpop.permute.xlu1 %1215  ;;  %v3653_v28 = vpop.permute.xlu0 %1213 }
 0x21b   : > { %5027 = vst [vmem:[#allocation114_spill] sm:$0xff] %v3651_v38  ;;  %5028 = vst [vmem:[#allocation115_spill] sm:$0xff] %v3653_v28  ;;  %v931_v28 = vmul.f32 0.25, %v3304_v43 }
 0x21c   : > { %1459 = vrot.lane.b32.xlu1 %v928_v35, %s2689_s28  ;;  %1457 = vrot.lane.b32.xlu0 %v927_v20, %s2689_s28  ;;  %v934_v20 = vmul.f32 0.25, %v3312_v22 }
 0x21e   : > { %v3659_v10 = vpop.permute.xlu1 %1219  ;;  %v3661_v46 = vpop.permute.xlu0 %1217 }
 0x21f   : > { %5029 = vst [vmem:[#allocation116_spill] sm:$0xff] %v3659_v10  ;;  %5030 = vst [vmem:[#allocation117_spill] sm:$0xff] %v3661_v46  ;;  %v933_v46 = vmul.f32 0.25, %v3314_v62 }
 0x220   : > { %1463 = vrot.lane.b32.xlu1 %v930_v48, %s2689_s28  ;;  %1461 = vrot.lane.b32.xlu0 %v929_v4, %s2689_s28  ;;  %v936_v4 = vmul.f32 0.25, %v3322_v53 }
 0x222   : > { %v3667_v38 = vpop.permute.xlu1 %1223  ;;  %v3669_v35 = vpop.permute.xlu0 %1221 }
 0x223   : > { %5031 = vst [vmem:[#allocation118_spill] sm:$0xff] %v3667_v38  ;;  %5032 = vst [vmem:[#allocation119_spill] sm:$0xff] %v3669_v35  ;;  %v935_v35 = vmul.f32 0.25, %v3324_v30 }
 0x224   : > { %1467 = vrot.lane.b32.xlu1 %v932_v57, %s2689_s28  ;;  %1465 = vrot.lane.b32.xlu0 %v931_v28, %s2689_s28  ;;  %v938_v28 = vmul.f32 0.25, %v3332_v5 }
 0x226   : > { %v3675_v10 = vpop.permute.xlu1 %1227  ;;  %v3677_v48 = vpop.permute.xlu0 %1225 }
 0x227   : > { %5033 = vst [vmem:[#allocation120_spill] sm:$0xff] %v3675_v10  ;;  %5034 = vst [vmem:[#allocation121_spill] sm:$0xff] %v3677_v48  ;;  %v937_v48 = vmul.f32 0.25, %v3334_v47 }
 0x228   : > { %1471 = vrot.lane.b32.xlu1 %v934_v20, %s2689_s28  ;;  %1469 = vrot.lane.b32.xlu0 %v933_v46, %s2689_s28  ;;  %v940_v46 = vmul.f32 0.25, %v3342_v45 }
 0x22a   : > { %v3683_v38 = vpop.permute.xlu1 %1231  ;;  %v3685_v57 = vpop.permute.xlu0 %1229 }
 0x22b   : > { %5035 = vst [vmem:[#allocation122_spill] sm:$0xff] %v3683_v38  ;;  %5036 = vst [vmem:[#allocation123_spill] sm:$0xff] %v3685_v57  ;;  %v939_v57 = vmul.f32 0.25, %v3344_v58 }
 0x22c   : > { %1475 = vrot.lane.b32.xlu1 %v936_v4, %s2689_s28  ;;  %1473 = vrot.lane.b32.xlu0 %v935_v35, %s2689_s28  ;;  %v942_v35 = vmul.f32 0.25, %v3352_v50 }
 0x22e   : > { %v3691_v10 = vpop.permute.xlu1 %1235  ;;  %v3693_v20 = vpop.permute.xlu0 %1233 }
 0x22f   : > { %5037 = vst [vmem:[#allocation124_spill] sm:$0xff] %v3691_v10  ;;  %5038 = vst [vmem:[#allocation125_spill] sm:$0xff] %v3693_v20  ;;  %v941_v20 = vmul.f32 0.25, %v3354_v14 }
 0x230   : > { %1479 = vrot.lane.b32.xlu1 %v938_v28, %s2689_s28  ;;  %1477 = vrot.lane.b32.xlu0 %v937_v48, %s2689_s28  ;;  %v944_v48 = vmul.f32 0.25, %v3362_v32 }
 0x232   : > { %v3699_v38 = vpop.permute.xlu1 %1239  ;;  %v3701_v4 = vpop.permute.xlu0 %1237 }
 0x233   : > { %5039 = vst [vmem:[#allocation126_spill] sm:$0xff] %v3699_v38  ;;  %5040 = vst [vmem:[#allocation127_spill] sm:$0xff] %v3701_v4  ;;  %v943_v4 = vmul.f32 0.25, %v3364_v37 }
 0x234   : > { %1483 = vrot.lane.b32.xlu1 %v940_v46, %s2689_s28  ;;  %1481 = vrot.lane.b32.xlu0 %v939_v57, %s2689_s28  ;;  %v946_v57 = vmul.f32 0.25, %v3372_v36 }
 0x236   : > { %v3707_v10 = vpop.permute.xlu1 %1243  ;;  %v3709_v28 = vpop.permute.xlu0 %1241 }
 0x237   : > { %5041 = vst [vmem:[#allocation128_spill] sm:$0xff] %v3707_v10  ;;  %5042 = vst [vmem:[#allocation129_spill] sm:$0xff] %v3709_v28  ;;  %v945_v28 = vmul.f32 0.25, %v3374_v39 }
 0x238   : > { %1487 = vrot.lane.b32.xlu1 %v942_v35, %s2689_s28  ;;  %1485 = vrot.lane.b32.xlu0 %v941_v20, %s2689_s28  ;;  %v948_v20 = vmul.f32 0.25, %v3386_v7 }
 0x23a   : > { %v3715_v38 = vpop.permute.xlu1 %1247  ;;  %v3717_v46 = vpop.permute.xlu0 %1245 }
 0x23b   : > { %5043 = vst [vmem:[#allocation130_spill] sm:$0xff] %v3715_v38  ;;  %5044 = vst [vmem:[#allocation131_spill] sm:$0xff] %v3717_v46  ;;  %v947_v46 = vmul.f32 0.25, %v3388_v13 }
 0x23c   : > { %1491 = vrot.lane.b32.xlu1 %v944_v48, %s2689_s28  ;;  %1489 = vrot.lane.b32.xlu0 %v943_v4, %s2689_s28  ;;  %v950_v4 = vmul.f32 0.25, %v3403_v3 }
 0x23e   : > { %v3723_v10 = vpop.permute.xlu1 %1251  ;;  %v3725_v35 = vpop.permute.xlu0 %1249 }
 0x23f   : > { %5045 = vst [vmem:[#allocation132_spill] sm:$0xff] %v3723_v10  ;;  %5046 = vst [vmem:[#allocation133_spill] sm:$0xff] %v3725_v35  ;;  %v949_v35 = vmul.f32 0.25, %v3406_v42 }
 0x240   : > { %1495 = vrot.lane.b32.xlu1 %v946_v57, %s2689_s28  ;;  %1493 = vrot.lane.b32.xlu0 %v945_v28, %s2689_s28  ;;  %v3741_v57 = vadd.f32 %v3392_v51, %v3378_v21  ;;  %v3745_v28 = vadd.f32 %v3396_v44, %v3384_v40  ;;  %v3757_v21 = vadd.f32 %v3414_v56, %v3392_v51 }
 0x241   : > { %v3761_v40 = vadd.f32 %v3418_v0, %v3396_v44 }
 0x242   : > { %v3731_v38 = vpop.permute.xlu1 %1255  ;;  %v3733_v48 = vpop.permute.xlu0 %1253  ;;  %5049 = vst [vmem:[#allocation136_spill] sm:$0xff] %v3741_v57  ;;  %5050 = vst [vmem:[#allocation137_spill] sm:$0xff] %v3745_v28 }
 0x243   : > { %5047 = vst [vmem:[#allocation134_spill] sm:$0xff] %v3731_v38  ;;  %5048 = vst [vmem:[#allocation135_spill] sm:$0xff] %v3733_v48 }
 0x244   : > { %1499 = vrot.lane.b32.xlu1 %v948_v20, %s2689_s28  ;;  %1497 = vrot.lane.b32.xlu0 %v947_v46, %s2689_s28  ;;  %v952_v46 = vmul.f32 0.25, %v3741_v57  ;;  %v951_v20 = vmul.f32 0.25, %v3745_v28  ;;  %5053 = vst [vmem:[#allocation140_spill] sm:$0xff] %v3757_v21  ;;  %5054 = vst [vmem:[#allocation141_spill] sm:$0xff] %v3761_v40  ;;  %v5059_v28 = vld [vmem:[#allocation81_spill] sm:$0xff] }
 0x245   : > { %v3777_v44 = vadd.f32 %v5059_v28, %v3418_v0 }
 0x246   : > { %v3747_v10 = vpop.permute.xlu1 %1259  ;;  %v3749_v38 = vpop.permute.xlu0 %1257 }
 0x247   : > { %5051 = vst [vmem:[#allocation138_spill] sm:$0xff] %v3747_v10  ;;  %5052 = vst [vmem:[#allocation139_spill] sm:$0xff] %v3749_v38  ;;  %v5057_v38 = vld [vmem:[#allocation80_spill] sm:$0xff] }
 0x248   : > { %1503 = vrot.lane.b32.xlu1 %v950_v4, %s2689_s28  ;;  %1501 = vrot.lane.b32.xlu0 %v949_v35, %s2689_s28  ;;  %v954_v35 = vmul.f32 0.25, %v3757_v21  ;;  %v953_v4 = vmul.f32 0.25, %v3761_v40  ;;  %v3773_v51 = vadd.f32 %v5057_v38, %v3414_v56  ;;  %5060 = vst [vmem:[#allocation81_spill] sm:$0xff] %v3777_v44  ;;  %v5065_v40 = vld [vmem:[#allocation83_spill] sm:$0xff] }
 0x249   : > { %v3793_v0 = vadd.f32 %v5065_v40, %v5059_v28 }
 0x24a   : > { %v3763_v48 = vpop.permute.xlu1 %1263  ;;  %v3765_v10 = vpop.permute.xlu0 %1261  ;;  %5058 = vst [vmem:[#allocation80_spill] sm:$0xff] %v3773_v51 }
 0x24b   : > { %5055 = vst [vmem:[#allocation142_spill] sm:$0xff] %v3763_v48  ;;  %5056 = vst [vmem:[#allocation143_spill] sm:$0xff] %v3765_v10  ;;  %v5063_v10 = vld [vmem:[#allocation82_spill] sm:$0xff] }
 0x24c   : > { %1507 = vrot.lane.b32.xlu1 %v952_v46, %s2689_s28  ;;  %1505 = vrot.lane.b32.xlu0 %v951_v20, %s2689_s28  ;;  %v956_v46 = vmul.f32 0.25, %v3773_v51  ;;  %v955_v20 = vmul.f32 0.25, %v3777_v44  ;;  %v3789_v56 = vadd.f32 %v5063_v10, %v5057_v38  ;;  %5066 = vst [vmem:[#allocation83_spill] sm:$0xff] %v3793_v0  ;;  %v5071_v44 = vld [vmem:[#allocation85_spill] sm:$0xff] }
 0x24d   : > { %v3809_v28 = vadd.f32 %v5071_v44, %v5065_v40 }
 0x24e   : > { %v3779_v57 = vpop.permute.xlu1 %1267  ;;  %v3781_v48 = vpop.permute.xlu0 %1265  ;;  %5064 = vst [vmem:[#allocation82_spill] sm:$0xff] %v3789_v56 }
 0x24f   : > { %5061 = vst [vmem:[#allocation144_spill] sm:$0xff] %v3779_v57  ;;  %5062 = vst [vmem:[#allocation145_spill] sm:$0xff] %v3781_v48  ;;  %v5069_v48 = vld [vmem:[#allocation84_spill] sm:$0xff] }
 0x250   : > { %1511 = vrot.lane.b32.xlu1 %v954_v35, %s2689_s28  ;;  %1509 = vrot.lane.b32.xlu0 %v953_v4, %s2689_s28  ;;  %v958_v35 = vmul.f32 0.25, %v3789_v56  ;;  %v957_v4 = vmul.f32 0.25, %v3793_v0  ;;  %v3805_v38 = vadd.f32 %v5069_v48, %v5063_v10  ;;  %5072 = vst [vmem:[#allocation85_spill] sm:$0xff] %v3809_v28  ;;  %v5077_v0 = vld [vmem:[#allocation87_spill] sm:$0xff] }
 0x251   : > { %v3825_v40 = vadd.f32 %v5077_v0, %v5071_v44 }
 0x252   : > { %v3795_v21 = vpop.permute.xlu1 %1271  ;;  %v3797_v57 = vpop.permute.xlu0 %1269  ;;  %5070 = vst [vmem:[#allocation84_spill] sm:$0xff] %v3805_v38 }
 0x253   : > { %5067 = vst [vmem:[#allocation146_spill] sm:$0xff] %v3795_v21  ;;  %5068 = vst [vmem:[#allocation147_spill] sm:$0xff] %v3797_v57  ;;  %v5075_v57 = vld [vmem:[#allocation86_spill] sm:$0xff] }
 0x254   : > { %1515 = vrot.lane.b32.xlu1 %v956_v46, %s2689_s28  ;;  %1513 = vrot.lane.b32.xlu0 %v955_v20, %s2689_s28  ;;  %v960_v46 = vmul.f32 0.25, %v3805_v38  ;;  %v959_v20 = vmul.f32 0.25, %v3809_v28  ;;  %v3821_v10 = vadd.f32 %v5075_v57, %v5069_v48  ;;  %5078 = vst [vmem:[#allocation87_spill] sm:$0xff] %v3825_v40  ;;  %v5083_v28 = vld [vmem:[#allocation89_spill] sm:$0xff] }
 0x255   : > { %v3841_v44 = vadd.f32 %v5083_v28, %v5077_v0 }
 0x256   : > { %v3811_v51 = vpop.permute.xlu1 %1275  ;;  %v3813_v21 = vpop.permute.xlu0 %1273  ;;  %5076 = vst [vmem:[#allocation86_spill] sm:$0xff] %v3821_v10 }
 0x257   : > { %5073 = vst [vmem:[#allocation148_spill] sm:$0xff] %v3811_v51  ;;  %5074 = vst [vmem:[#allocation149_spill] sm:$0xff] %v3813_v21  ;;  %v5081_v21 = vld [vmem:[#allocation88_spill] sm:$0xff] }
 0x258   : > { %1519 = vrot.lane.b32.xlu1 %v958_v35, %s2689_s28  ;;  %1517 = vrot.lane.b32.xlu0 %v957_v4, %s2689_s28  ;;  %v962_v35 = vmul.f32 0.25, %v3821_v10  ;;  %v961_v4 = vmul.f32 0.25, %v3825_v40  ;;  %v3837_v48 = vadd.f32 %v5081_v21, %v5075_v57  ;;  %5084 = vst [vmem:[#allocation89_spill] sm:$0xff] %v3841_v44  ;;  %v5089_v40 = vld [vmem:[#allocation91_spill] sm:$0xff] }
 0x259   : > { %v3857_v0 = vadd.f32 %v5089_v40, %v5083_v28 }
 0x25a   : > { %v3827_v56 = vpop.permute.xlu1 %1279  ;;  %v3829_v51 = vpop.permute.xlu0 %1277  ;;  %5082 = vst [vmem:[#allocation88_spill] sm:$0xff] %v3837_v48 }
 0x25b   : > { %5079 = vst [vmem:[#allocation150_spill] sm:$0xff] %v3827_v56  ;;  %5080 = vst [vmem:[#allocation151_spill] sm:$0xff] %v3829_v51  ;;  %v5087_v51 = vld [vmem:[#allocation90_spill] sm:$0xff] }
 0x25c   : > { %1523 = vrot.lane.b32.xlu1 %v960_v46, %s2689_s28  ;;  %1521 = vrot.lane.b32.xlu0 %v959_v20, %s2689_s28  ;;  %v964_v46 = vmul.f32 0.25, %v3837_v48  ;;  %v963_v20 = vmul.f32 0.25, %v3841_v44  ;;  %v3853_v57 = vadd.f32 %v5087_v51, %v5081_v21  ;;  %5090 = vst [vmem:[#allocation91_spill] sm:$0xff] %v3857_v0  ;;  %v5094_v44 = vld [vmem:[#allocation93_spill] sm:$0xff] }
 0x25d   : > { %v3873_v28 = vadd.f32 %v5094_v44, %v5089_v40 }
 0x25e   : > { %v3843_v38 = vpop.permute.xlu1 %1283  ;;  %v3845_v56 = vpop.permute.xlu0 %1281  ;;  %5088 = vst [vmem:[#allocation90_spill] sm:$0xff] %v3853_v57 }
 0x25f   : > { %5085 = vst [vmem:[#allocation152_spill] sm:$0xff] %v3843_v38  ;;  %5086 = vst [vmem:[#allocation153_spill] sm:$0xff] %v3845_v56  ;;  %v5093_v56 = vld [vmem:[#allocation92_spill] sm:$0xff] }
 0x260   : > { %1527 = vrot.lane.b32.xlu1 %v962_v35, %s2689_s28  ;;  %1525 = vrot.lane.b32.xlu0 %v961_v4, %s2689_s28  ;;  %v966_v35 = vmul.f32 0.25, %v3853_v57  ;;  %v965_v4 = vmul.f32 0.25, %v3857_v0  ;;  %v3869_v21 = vadd.f32 %v5093_v56, %v5087_v51  ;;  %v5098_v0 = vld [vmem:[#allocation95_spill] sm:$0xff] }
 0x261   : > { %v3889_v40 = vadd.f32 %v5098_v0, %v5094_v44 }
 0x262   : > { %v3859_v10 = vpop.permute.xlu1 %1287  ;;  %v3861_v38 = vpop.permute.xlu0 %1285 }
 0x263   : > { %5091 = vst [vmem:[#allocation154_spill] sm:$0xff] %v3859_v10  ;;  %5092 = vst [vmem:[#allocation155_spill] sm:$0xff] %v3861_v38  ;;  %v5097_v38 = vld [vmem:[#allocation94_spill] sm:$0xff]  ;;  %v969_v44 = vmul.f32 0.25, %v3889_v40 }
 0x264   : > { %1531 = vrot.lane.b32.xlu1 %v964_v46, %s2689_s28  ;;  %1529 = vrot.lane.b32.xlu0 %v963_v20, %s2689_s28  ;;  %v968_v46 = vmul.f32 0.25, %v3869_v21  ;;  %v967_v20 = vmul.f32 0.25, %v3873_v28  ;;  %v3885_v51 = vadd.f32 %v5097_v38, %v5093_v56 }
 0x266   : > { %v3875_v48 = vpop.permute.xlu1 %1291  ;;  %v3877_v10 = vpop.permute.xlu0 %1289  ;;  %v970_v56 = vmul.f32 0.25, %v3885_v51 }
 0x267   : > { %5095 = vst [vmem:[#allocation92_spill] sm:$0xff] %v3875_v48  ;;  %5096 = vst [vmem:[#allocation93_spill] sm:$0xff] %v3877_v10 }
 0x268   : > { %1535 = vrot.lane.b32.xlu1 %v966_v35, %s2689_s28  ;;  %1533 = vrot.lane.b32.xlu0 %v965_v4, %s2689_s28  ;;  %v3897_v35 = vadd.f32 %v3522_v16, %v5097_v38  ;;  %v3901_v4 = vadd.f32 %v3534_v60, %v5098_v0  ;;  %v974_v16 = vadd.f32 %v3543_v2, %v3570_v41 }
 0x269   : > { %v973_v38 = vadd.f32 %v3547_v8, %v3573_v27  ;;  %v844_v0 = vadd.f32 %v3236_v9, %v3557_v33  ;;  %v978_v9 = vadd.f32 %v5009_v25, %v3543_v2 }
 0x26a   : > { %v3891_v57 = vpop.permute.xlu1 %1423  ;;  %v3893_v48 = vpop.permute.xlu0 %1421  ;;  %5101 = vst [vmem:[#allocation156_spill] sm:$0xff] %v3901_v4  ;;  %v971_v60 = vmul.f32 0.25, %v3901_v4  ;;  %v1038_v41 = vmul.f32 0.125, %v974_v16 }
 0x26b   : > { %5099 = vst [vmem:[#allocation94_spill] sm:$0xff] %v3891_v57  ;;  %5100 = vst [vmem:[#allocation95_spill] sm:$0xff] %v3893_v48  ;;  %v972_v48 = vmul.f32 0.25, %v3897_v35 }
 0x26c   : > { %1539 = vrot.lane.b32.xlu1 %v968_v46, %s2689_s28  ;;  %1537 = vrot.lane.b32.xlu0 %v967_v20, %s2689_s28  ;;  %v843_v46 = vadd.f32 %v3526_v29, %v3561_v12 }
 0x26e   : > { %v3907_v10 = vpop.permute.xlu1 %1427  ;;  %v3909_v57 = vpop.permute.xlu0 %1425 }
 0x26f   : > { %5102 = vst [vmem:[#allocation157_spill] sm:$0xff] %v3907_v10  ;;  %5103 = vst [vmem:[#allocation158_spill] sm:$0xff] %v3909_v57  ;;  %v5104_v10 = vld [vmem:[#allocation75_spill] sm:$0xff] }
 0x270   : > { %1543 = vrot.lane.b32.xlu1 %v970_v56, %s2689_s28  ;;  %1541 = vrot.lane.b32.xlu0 %v969_v44, %s2689_s28  ;;  %v1037_v56 = vmul.f32 0.125, %v973_v38  ;;  %v976_v44 = vadd.f32 %v5006_v26, %v844_v0  ;;  %v975_v27 = vadd.f32 %v5104_v10, %v843_v46  ;;  %v1042_v38 = vmul.f32 0.125, %v978_v9 }
 0x271   : > { %v980_v46 = vadd.f32 %v5013_v52, %v5006_v26 }
 0x272   : > { %v3923_v20 = vpop.permute.xlu1 %1431  ;;  %v3925_v57 = vpop.permute.xlu0 %1429  ;;  %v1040_v12 = vmul.f32 0.125, %v976_v44  ;;  %v1039_v29 = vmul.f32 0.125, %v975_v27  ;;  %v982_v27 = vadd.f32 %v3262_v18, %v5009_v25 }
 0x274   : > { %1547 = vrot.lane.b32.xlu1 %v972_v48, %s2689_s28  ;;  %1545 = vrot.lane.b32.xlu0 %v971_v60, %s2689_s28  ;;  %v977_v48 = vadd.f32 %v5010_v34, %v3547_v8  ;;  %v1044_v8 = vmul.f32 0.125, %v980_v46 }
 0x276   : > { %v3931_v4 = vpop.permute.xlu1 %1435  ;;  %v3933_v33 = vpop.permute.xlu0 %1433  ;;  %v1041_v0 = vmul.f32 0.125, %v977_v48  ;;  %v984_v48 = vadd.f32 %v3266_v17, %v5013_v52 }
 0x278   : > { %1679 = vrot.lane.b32.xlu1 %v1038_v41, %s2690_s29  ;;  %1677 = vrot.lane.b32.xlu0 %v1037_v56, %s2690_s29  ;;  %v979_v41 = vadd.f32 %v5014_v19, %v5104_v10  ;;  %v1046_v10 = vmul.f32 0.125, %v982_v27 }
 0x27a   : > { %v3941_v16 = vpop.permute.xlu1 %1439  ;;  %v3943_v60 = vpop.permute.xlu0 %1437  ;;  %v1043_v44 = vmul.f32 0.125, %v979_v41  ;;  %v986_v41 = vadd.f32 %v3270_v54, %v3262_v18 }
 0x27c   : > { %1683 = vrot.lane.b32.xlu1 %v1040_v12, %s2690_s29  ;;  %1681 = vrot.lane.b32.xlu0 %v1039_v29, %s2690_s29  ;;  %v981_v12 = vadd.f32 %v3264_v24, %v5010_v34  ;;  %v1048_v34 = vmul.f32 0.125, %v984_v48 }
 0x27e   : > { %v3951_v2 = vpop.permute.xlu1 %1443  ;;  %v3953_v56 = vpop.permute.xlu0 %1441  ;;  %v1045_v9 = vmul.f32 0.125, %v981_v12  ;;  %v988_v12 = vadd.f32 %v3274_v11, %v3266_v17 }
 0x280   : > { %1687 = vrot.lane.b32.xlu1 %v1042_v38, %s2690_s29  ;;  %1685 = vrot.lane.b32.xlu0 %v1041_v0, %s2690_s29  ;;  %v983_v38 = vadd.f32 %v3268_v1, %v5014_v19  ;;  %v1050_v19 = vmul.f32 0.125, %v986_v41 }
 0x282   : > { %v3961_v26 = vpop.permute.xlu1 %1447  ;;  %v3963_v29 = vpop.permute.xlu0 %1445  ;;  %v1047_v46 = vmul.f32 0.125, %v983_v38  ;;  %v990_v38 = vadd.f32 %v3284_v55, %v3270_v54 }
 0x284   : > { %1691 = vrot.lane.b32.xlu1 %v1044_v8, %s2690_s29  ;;  %1689 = vrot.lane.b32.xlu0 %v1043_v44, %s2690_s29  ;;  %v985_v8 = vadd.f32 %v3272_v23, %v3264_v24  ;;  %v1052_v24 = vmul.f32 0.125, %v988_v12 }
 0x286   : > { %v3971_v25 = vpop.permute.xlu1 %1451  ;;  %v3973_v0 = vpop.permute.xlu0 %1449  ;;  %v1049_v27 = vmul.f32 0.125, %v985_v8  ;;  %v992_v8 = vadd.f32 %v3288_v63, %v3274_v11 }
 0x288   : > { %1695 = vrot.lane.b32.xlu1 %v1046_v10, %s2690_s29  ;;  %1693 = vrot.lane.b32.xlu0 %v1045_v9, %s2690_s29  ;;  %v987_v10 = vadd.f32 %v3278_v59, %v3268_v1  ;;  %v1054_v1 = vmul.f32 0.125, %v990_v38 }
 0x28a   : > { %v3981_v52 = vpop.permute.xlu1 %1455  ;;  %v3983_v44 = vpop.permute.xlu0 %1453  ;;  %v1051_v48 = vmul.f32 0.125, %v987_v10  ;;  %v994_v10 = vadd.f32 %v3292_v6, %v3284_v55 }
 0x28c   : > { %1699 = vrot.lane.b32.xlu1 %v1048_v34, %s2690_s29  ;;  %1697 = vrot.lane.b32.xlu0 %v1047_v46, %s2690_s29  ;;  %v989_v34 = vadd.f32 %v3286_v31, %v3272_v23  ;;  %v1056_v23 = vmul.f32 0.125, %v992_v8 }
 0x28e   : > { %v3991_v18 = vpop.permute.xlu1 %1459  ;;  %v3993_v9 = vpop.permute.xlu0 %1457  ;;  %v1053_v41 = vmul.f32 0.125, %v989_v34  ;;  %v996_v34 = vadd.f32 %v3302_v15, %v3288_v63 }
 0x290   : > { %1703 = vrot.lane.b32.xlu1 %v1050_v19, %s2690_s29  ;;  %1701 = vrot.lane.b32.xlu0 %v1049_v27, %s2690_s29  ;;  %v991_v19 = vadd.f32 %v3290_v61, %v3278_v59  ;;  %v1058_v59 = vmul.f32 0.125, %v994_v10 }
 0x292   : > { %v4001_v17 = vpop.permute.xlu1 %1463  ;;  %v4003_v46 = vpop.permute.xlu0 %1461  ;;  %v1055_v12 = vmul.f32 0.125, %v991_v19  ;;  %v998_v19 = vadd.f32 %v3312_v22, %v3292_v6 }
 0x294   : > { %1707 = vrot.lane.b32.xlu1 %v1052_v24, %s2690_s29  ;;  %1705 = vrot.lane.b32.xlu0 %v1051_v48, %s2690_s29  ;;  %v993_v24 = vadd.f32 %v3294_v49, %v3286_v31  ;;  %v1060_v31 = vmul.f32 0.125, %v996_v34 }
 0x296   : > { %v4011_v54 = vpop.permute.xlu1 %1467  ;;  %v4013_v27 = vpop.permute.xlu0 %1465  ;;  %v1057_v38 = vmul.f32 0.125, %v993_v24  ;;  %v1000_v24 = vadd.f32 %v3322_v53, %v3302_v15 }
 0x298   : > { %1711 = vrot.lane.b32.xlu1 %v1054_v1, %s2690_s29  ;;  %1709 = vrot.lane.b32.xlu0 %v1053_v41, %s2690_s29  ;;  %v995_v1 = vadd.f32 %v3304_v43, %v3290_v61  ;;  %v1062_v61 = vmul.f32 0.125, %v998_v19 }
 0x29a   : > { %v4021_v11 = vpop.permute.xlu1 %1471  ;;  %v4023_v48 = vpop.permute.xlu0 %1469  ;;  %v1059_v8 = vmul.f32 0.125, %v995_v1  ;;  %v1002_v1 = vadd.f32 %v3332_v5, %v3312_v22 }
 0x29c   : > { %1715 = vrot.lane.b32.xlu1 %v1056_v23, %s2690_s29  ;;  %1713 = vrot.lane.b32.xlu0 %v1055_v12, %s2690_s29  ;;  %v997_v23 = vadd.f32 %v3314_v62, %v3294_v49  ;;  %v1064_v49 = vmul.f32 0.125, %v1000_v24 }
 0x29e   : > { %v4031_v55 = vpop.permute.xlu1 %1475  ;;  %v4033_v41 = vpop.permute.xlu0 %1473  ;;  %v1061_v10 = vmul.f32 0.125, %v997_v23  ;;  %v1004_v23 = vadd.f32 %v3342_v45, %v3322_v53 }
 0x2a0   : > { %1719 = vrot.lane.b32.xlu1 %v1058_v59, %s2690_s29  ;;  %1717 = vrot.lane.b32.xlu0 %v1057_v38, %s2690_s29  ;;  %v999_v59 = vadd.f32 %v3324_v30, %v3304_v43  ;;  %v1066_v43 = vmul.f32 0.125, %v1002_v1 }
 0x2a2   : > { %v4041_v63 = vpop.permute.xlu1 %1479  ;;  %v4043_v12 = vpop.permute.xlu0 %1477  ;;  %v1063_v34 = vmul.f32 0.125, %v999_v59  ;;  %v1006_v59 = vadd.f32 %v3352_v50, %v3332_v5 }
 0x2a4   : > { %1723 = vrot.lane.b32.xlu1 %v1060_v31, %s2690_s29  ;;  %1721 = vrot.lane.b32.xlu0 %v1059_v8, %s2690_s29  ;;  %v1001_v31 = vadd.f32 %v3334_v47, %v3314_v62  ;;  %v1068_v62 = vmul.f32 0.125, %v1004_v23 }
 0x2a6   : > { %v4051_v6 = vpop.permute.xlu1 %1483  ;;  %v4053_v38 = vpop.permute.xlu0 %1481  ;;  %v1065_v19 = vmul.f32 0.125, %v1001_v31  ;;  %v1008_v31 = vadd.f32 %v3362_v32, %v3342_v45 }
 0x2a8   : > { %1727 = vrot.lane.b32.xlu1 %v1062_v61, %s2690_s29  ;;  %1725 = vrot.lane.b32.xlu0 %v1061_v10, %s2690_s29  ;;  %v1003_v61 = vadd.f32 %v3344_v58, %v3324_v30  ;;  %v1070_v30 = vmul.f32 0.125, %v1006_v59 }
 0x2aa   : > { %v4061_v15 = vpop.permute.xlu1 %1487  ;;  %v4063_v8 = vpop.permute.xlu0 %1485  ;;  %v1067_v24 = vmul.f32 0.125, %v1003_v61  ;;  %v1010_v61 = vadd.f32 %v3372_v36, %v3352_v50 }
 0x2ac   : > { %1731 = vrot.lane.b32.xlu1 %v1064_v49, %s2690_s29  ;;  %1729 = vrot.lane.b32.xlu0 %v1063_v34, %s2690_s29  ;;  %v1005_v49 = vadd.f32 %v3354_v14, %v3334_v47  ;;  %v1072_v47 = vmul.f32 0.125, %v1008_v31 }
 0x2ae   : > { %v4071_v22 = vpop.permute.xlu1 %1491  ;;  %v4073_v10 = vpop.permute.xlu0 %1489  ;;  %v1069_v1 = vmul.f32 0.125, %v1005_v49  ;;  %v1012_v49 = vadd.f32 %v3386_v7, %v3362_v32 }
 0x2b0   : > { %1735 = vrot.lane.b32.xlu1 %v1066_v43, %s2690_s29  ;;  %1733 = vrot.lane.b32.xlu0 %v1065_v19, %s2690_s29  ;;  %v1007_v43 = vadd.f32 %v3364_v37, %v3344_v58  ;;  %v1074_v58 = vmul.f32 0.125, %v1010_v61 }
 0x2b2   : > { %v4081_v53 = vpop.permute.xlu1 %1495  ;;  %v4083_v34 = vpop.permute.xlu0 %1493  ;;  %v1071_v23 = vmul.f32 0.125, %v1007_v43  ;;  %v1014_v43 = vadd.f32 %v3403_v3, %v3372_v36 }
 0x2b4   : > { %1739 = vrot.lane.b32.xlu1 %v1068_v62, %s2690_s29  ;;  %1737 = vrot.lane.b32.xlu0 %v1067_v24, %s2690_s29  ;;  %v1009_v62 = vadd.f32 %v3374_v39, %v3354_v14  ;;  %v1076_v14 = vmul.f32 0.125, %v1012_v49 }
 0x2b6   : > { %v4091_v5 = vpop.permute.xlu1 %1499  ;;  %v4093_v19 = vpop.permute.xlu0 %1497  ;;  %v1073_v59 = vmul.f32 0.125, %v1009_v62  ;;  %v5107_v62 = vld [vmem:[#allocation136_spill] sm:$0xff] }
 0x2b8   : > { %1743 = vrot.lane.b32.xlu1 %v1070_v30, %s2690_s29  ;;  %1741 = vrot.lane.b32.xlu0 %v1069_v1, %s2690_s29  ;;  %v1011_v30 = vadd.f32 %v3388_v13, %v3364_v37  ;;  %v1078_v37 = vmul.f32 0.125, %v1014_v43 }
 0x2ba   : > { %v4101_v45 = vpop.permute.xlu1 %1503  ;;  %v4103_v24 = vpop.permute.xlu0 %1501  ;;  %v1075_v31 = vmul.f32 0.125, %v1011_v30 }
 0x2bc   : > { %1747 = vrot.lane.b32.xlu1 %v1072_v47, %s2690_s29  ;;  %1745 = vrot.lane.b32.xlu0 %v1071_v23, %s2690_s29  ;;  %v1013_v47 = vadd.f32 %v3406_v42, %v3374_v39 }
 0x2be   : > { %v4111_v50 = vpop.permute.xlu1 %1507  ;;  %v4113_v1 = vpop.permute.xlu0 %1505  ;;  %v1077_v61 = vmul.f32 0.125, %v1013_v47  ;;  %v5112_v47 = vld [vmem:[#allocation141_spill] sm:$0xff] }
 0x2c0   : > { %1751 = vrot.lane.b32.xlu1 %v1074_v58, %s2690_s29  ;;  %1749 = vrot.lane.b32.xlu0 %v1073_v59, %s2690_s29  ;;  %v1016_v58 = vadd.f32 %v5107_v62, %v3386_v7  ;;  %v5108_v59 = vld [vmem:[#allocation137_spill] sm:$0xff] }
 0x2c1   : > { %v1015_v49 = vadd.f32 %v5108_v59, %v3388_v13 }
 0x2c2   : > { %v4121_v32 = vpop.permute.xlu1 %1511  ;;  %v4123_v23 = vpop.permute.xlu0 %1509  ;;  %v1080_v39 = vmul.f32 0.125, %v1016_v58 }
 0x2c3   : > { %5105 = vst [vmem:[#allocation75_spill] sm:$0xff] %v4121_v32  ;;  %5106 = vst [vmem:[#allocation159_spill] sm:$0xff] %v4123_v23  ;;  %v1017_v23 = vadd.f32 %v5112_v47, %v3406_v42 }
 0x2c4   : > { %1755 = vrot.lane.b32.xlu1 %v1076_v14, %s2690_s29  ;;  %1753 = vrot.lane.b32.xlu0 %v1075_v31, %s2690_s29  ;;  %v1079_v14 = vmul.f32 0.125, %v1015_v49  ;;  %v5111_v31 = vld [vmem:[#allocation140_spill] sm:$0xff]  ;;  %v5116_v49 = vld [vmem:[#allocation81_spill] sm:$0xff] }
 0x2c5   : > { %v1018_v43 = vadd.f32 %v5111_v31, %v3403_v3 }
 0x2c6   : > { %v4131_v36 = vpop.permute.xlu1 %1515  ;;  %v4133_v30 = vpop.permute.xlu0 %1513 }
 0x2c7   : > { %5109 = vst [vmem:[#allocation136_spill] sm:$0xff] %v4131_v36  ;;  %5110 = vst [vmem:[#allocation137_spill] sm:$0xff] %v4133_v30  ;;  %v1082_v13 = vmul.f32 0.125, %v1018_v43  ;;  %v1019_v30 = vadd.f32 %v5116_v49, %v5108_v59 }
 0x2c8   : > { %1759 = vrot.lane.b32.xlu1 %v1078_v37, %s2690_s29  ;;  %1757 = vrot.lane.b32.xlu0 %v1077_v61, %s2690_s29  ;;  %v1081_v37 = vmul.f32 0.125, %v1017_v23  ;;  %v5115_v61 = vld [vmem:[#allocation80_spill] sm:$0xff]  ;;  %v5120_v23 = vld [vmem:[#allocation83_spill] sm:$0xff] }
 0x2c9   : > { %v1020_v58 = vadd.f32 %v5115_v61, %v5107_v62 }
 0x2ca   : > { %v4141_v7 = vpop.permute.xlu1 %1519  ;;  %v4143_v32 = vpop.permute.xlu0 %1517 }
 0x2cb   : > { %5113 = vst [vmem:[#allocation140_spill] sm:$0xff] %v4141_v7  ;;  %5114 = vst [vmem:[#allocation141_spill] sm:$0xff] %v4143_v32  ;;  %v1084_v42 = vmul.f32 0.125, %v1020_v58  ;;  %v1021_v32 = vadd.f32 %v5120_v23, %v5112_v47 }
 0x2cc   : > { %1763 = vrot.lane.b32.xlu1 %v1080_v39, %s2690_s29  ;;  %1761 = vrot.lane.b32.xlu0 %v1079_v14, %s2690_s29  ;;  %v1083_v39 = vmul.f32 0.125, %v1019_v30  ;;  %v5119_v14 = vld [vmem:[#allocation82_spill] sm:$0xff]  ;;  %v5124_v30 = vld [vmem:[#allocation85_spill] sm:$0xff] }
 0x2cd   : > { %v1022_v43 = vadd.f32 %v5119_v14, %v5111_v31 }
 0x2ce   : > { %v4151_v3 = vpop.permute.xlu1 %1523  ;;  %v4153_v36 = vpop.permute.xlu0 %1521 }
 0x2cf   : > { %5117 = vst [vmem:[#allocation80_spill] sm:$0xff] %v4151_v3  ;;  %5118 = vst [vmem:[#allocation81_spill] sm:$0xff] %v4153_v36  ;;  %v1086_v59 = vmul.f32 0.125, %v1022_v43  ;;  %v1023_v36 = vadd.f32 %v5124_v30, %v5116_v49 }
 0x2d0   : > { %1767 = vrot.lane.b32.xlu1 %v1082_v13, %s2690_s29  ;;  %1765 = vrot.lane.b32.xlu0 %v1081_v37, %s2690_s29  ;;  %v1085_v13 = vmul.f32 0.125, %v1021_v32  ;;  %v5123_v37 = vld [vmem:[#allocation84_spill] sm:$0xff]  ;;  %v5128_v32 = vld [vmem:[#allocation87_spill] sm:$0xff] }
 0x2d1   : > { %v1024_v58 = vadd.f32 %v5123_v37, %v5115_v61 }
 0x2d2   : > { %v4161_v62 = vpop.permute.xlu1 %1527  ;;  %v4163_v7 = vpop.permute.xlu0 %1525 }
 0x2d3   : > { %5121 = vst [vmem:[#allocation82_spill] sm:$0xff] %v4161_v62  ;;  %5122 = vst [vmem:[#allocation83_spill] sm:$0xff] %v4163_v7  ;;  %v1088_v47 = vmul.f32 0.125, %v1024_v58  ;;  %v1025_v7 = vadd.f32 %v5128_v32, %v5120_v23 }
 0x2d4   : > { %1771 = vrot.lane.b32.xlu1 %v1084_v42, %s2690_s29  ;;  %1769 = vrot.lane.b32.xlu0 %v1083_v39, %s2690_s29  ;;  %v1087_v42 = vmul.f32 0.125, %v1023_v36  ;;  %v5127_v39 = vld [vmem:[#allocation86_spill] sm:$0xff]  ;;  %v5132_v36 = vld [vmem:[#allocation89_spill] sm:$0xff] }
 0x2d5   : > { %v1026_v43 = vadd.f32 %v5127_v39, %v5119_v14 }
 0x2d6   : > { %v4171_v31 = vpop.permute.xlu1 %1531  ;;  %v4173_v3 = vpop.permute.xlu0 %1529 }
 0x2d7   : > { %5125 = vst [vmem:[#allocation84_spill] sm:$0xff] %v4171_v31  ;;  %5126 = vst [vmem:[#allocation85_spill] sm:$0xff] %v4173_v3  ;;  %v1090_v49 = vmul.f32 0.125, %v1026_v43  ;;  %v1027_v3 = vadd.f32 %v5132_v36, %v5124_v30 }
 0x2d8   : > { %1775 = vrot.lane.b32.xlu1 %v1086_v59, %s2690_s29  ;;  %1773 = vrot.lane.b32.xlu0 %v1085_v13, %s2690_s29  ;;  %v1089_v59 = vmul.f32 0.125, %v1025_v7  ;;  %v5131_v13 = vld [vmem:[#allocation88_spill] sm:$0xff]  ;;  %v5135_v7 = vld [vmem:[#allocation91_spill] sm:$0xff] }
 0x2d9   : > { %v1028_v58 = vadd.f32 %v5131_v13, %v5123_v37 }
 0x2da   : > { %v4181_v61 = vpop.permute.xlu1 %1535  ;;  %v4183_v62 = vpop.permute.xlu0 %1533 }
 0x2db   : > { %5129 = vst [vmem:[#allocation86_spill] sm:$0xff] %v4181_v61  ;;  %5130 = vst [vmem:[#allocation87_spill] sm:$0xff] %v4183_v62  ;;  %v1092_v23 = vmul.f32 0.125, %v1028_v58  ;;  %v1029_v62 = vadd.f32 %v5135_v7, %v5128_v32 }
 0x2dc   : > { %1779 = vrot.lane.b32.xlu1 %v1088_v47, %s2690_s29  ;;  %1777 = vrot.lane.b32.xlu0 %v1087_v42, %s2690_s29  ;;  %v1091_v47 = vmul.f32 0.125, %v1027_v3  ;;  %v5134_v42 = vld [vmem:[#allocation90_spill] sm:$0xff]  ;;  %v1031_v3 = vadd.f32 %v3873_v28, %v5132_v36  ;;  %v1033_v36 = vadd.f32 %v3889_v40, %v5135_v7 }
 0x2dd   : > { %v1030_v43 = vadd.f32 %v5134_v42, %v5127_v39 }
 0x2de   : > { %v4191_v14 = vpop.permute.xlu1 %1539  ;;  %v4193_v31 = vpop.permute.xlu0 %1537  ;;  %v1097_v7 = vmul.f32 0.125, %v1033_v36 }
 0x2df   : > { %5133 = vst [vmem:[#allocation88_spill] sm:$0xff] %v4193_v31  ;;  %v1094_v30 = vmul.f32 0.125, %v1030_v43 }
 0x2e0   : > { %1783 = vrot.lane.b32.xlu1 %v1090_v49, %s2690_s29  ;;  %1781 = vrot.lane.b32.xlu0 %v1089_v59, %s2690_s29  ;;  %v1093_v49 = vmul.f32 0.125, %v1029_v62  ;;  %v1032_v59 = vadd.f32 %v3869_v21, %v5131_v13  ;;  %v1095_v62 = vmul.f32 0.125, %v1031_v3  ;;  %v1034_v13 = vadd.f32 %v3885_v51, %v5134_v42 }
 0x2e2   : > { %v4201_v37 = vpop.permute.xlu1 %1543  ;;  %v4203_v61 = vpop.permute.xlu0 %1541  ;;  %v1096_v32 = vmul.f32 0.125, %v1032_v59  ;;  %v1098_v42 = vmul.f32 0.125, %v1034_v13 }
 0x2e3   : > { %5136 = vst [vmem:[#allocation89_spill] sm:$0xff] %v4201_v37  ;;  %5137 = vst [vmem:[#allocation90_spill] sm:$0xff] %v4203_v61  ;;  %v5144_v37 = vld [vmem:[#allocation94_spill] sm:$0xff] }
 0x2e4   : > { %1787 = vrot.lane.b32.xlu1 %v1092_v23, %s2690_s29  ;;  %1785 = vrot.lane.b32.xlu0 %v1091_v47, %s2690_s29  ;;  %v5140_v23 = vld [vmem:[#allocation97_spill] sm:$0xff] }
 0x2e5   : > { %v5141_v47 = vld [vmem:[#allocation9_spill] sm:$0xff] }
 0x2e6   : > { %v4211_v39 = vpop.permute.xlu1 %1547  ;;  %v4213_v58 = vpop.permute.xlu0 %1545  ;;  %v1870_v43 = vsel %vm699_vm1, %v5141_v47, %v5140_v23  ;;  %v5148_v23 = vld [vmem:[#allocation15_spill] sm:$0xff]  ;;  %v5149_v47 = vld [vmem:[#allocation73_spill] sm:$0xff] }
 0x2e7   : > { %5138 = vst [vmem:[#allocation91_spill] sm:$0xff] %v4211_v39  ;;  %5139 = vst [vmem:[#allocation160_spill] sm:$0xff] %v4213_v58  ;;  %v5142_v58 = vld [vmem:[#allocation98_spill] sm:$0xff]  ;;  %v5143_v39 = vld [vmem:[#allocation11_spill] sm:$0xff] }
 0x2e8   : > { %1791 = vrot.lane.b32.xlu1 %v1094_v30, %s2690_s29  ;;  %1789 = vrot.lane.b32.xlu0 %v1093_v49, %s2690_s29  ;;  %v1869_v61 = vsel %vm699_vm1, %v5143_v39, %v5142_v58  ;;  %v1935_v30 = vsel %vm1933_vm2, %v1870_v43, %v5144_v37  ;;  %v5145_v49 = vld [vmem:[#allocation95_spill] sm:$0xff]  ;;  %v1036_v37 = vadd.f32 %v3897_v35, %v3869_v21  ;;  %v5147_v58 = vld [vmem:[#allocation96_spill] sm:$0xff]  ;;  %v5150_v43 = vld [vmem:[#allocation13_spill] sm:$0xff] }
 0x2e9   : > { %v1934_v59 = vsel %vm1933_vm2, %v1869_v61, %v5145_v49  ;;  %v5146_v61 = vld [vmem:[#allocation156_spill] sm:$0xff]  ;;  %v5151_v49 = vld [vmem:[#allocation157_spill] sm:$0xff] }
 0x2ea   : > { %v1680_v3 = vpop.permute.xlu1 %1679  ;;  %v1678_v31 = vpop.permute.xlu0 %1677  ;;  %v1035_v39 = vadd.f32 %v5146_v61, %v3873_v28  ;;  %v1100_v35 = vmul.f32 0.125, %v1036_v37 }
 0x2eb   : > { %v2000_v51 = vsel %vm1998_vm3, %v1935_v30, %v1680_v3  ;;  %v1999_v40 = vsel %vm1998_vm3, %v1934_v59, %v1678_v31  ;;  %v1871_v31 = vsel %vm699_vm1, %v5148_v23, %v5147_v58  ;;  %v1872_v30 = vsel %vm699_vm1, %v5150_v43, %v5149_v47  ;;  %v5155_v58 = vld [vmem:[#allocation100_spill] sm:$0xff]  ;;  %v5156_v23 = vld [vmem:[#allocation19_spill] sm:$0xff] }
 0x2ec   : > { %2064 = vst [vmem:[%s3148_s21 + $0x8] sm:$0xff] %v2000_v51  ;;  %2063 = vst [vmem:[%s3148_s21] sm:$0xff] %v1999_v40  ;;  %1795 = vrot.lane.b32.xlu1 %v1096_v32, %s2690_s29  ;;  %1793 = vrot.lane.b32.xlu0 %v1095_v62, %s2690_s29  ;;  %v1937_v32 = vsel %vm1933_vm2, %v1872_v30, %v5151_v49  ;;  %v5152_v62 = vld [vmem:[#allocation158_spill] sm:$0xff]  ;;  %v1099_v3 = vmul.f32 0.125, %v1035_v39  ;;  %v5153_v51 = vld [vmem:[#allocation99_spill] sm:$0xff] }
 0x2ed   : > { %v1936_v13 = vsel %vm1933_vm2, %v1871_v31, %v5152_v62  ;;  %v5154_v40 = vld [vmem:[#allocation17_spill] sm:$0xff]  ;;  %v1873_v31 = vsel %vm699_vm1, %v5156_v23, %v5155_v58  ;;  %v5164_v58 = vld [vmem:[#allocation27_spill] sm:$0xff] }
 0x2ee   : > { %v1684_v36 = vpop.permute.xlu1 %1683  ;;  %v1682_v59 = vpop.permute.xlu0 %1681  ;;  %v1874_v61 = vsel %vm699_vm1, %v5154_v40, %v5153_v51  ;;  %v1938_v43 = vsel %vm1933_vm2, %v1873_v31, %v3925_v57  ;;  %v5157_v39 = vld [vmem:[#allocation101_spill] sm:$0xff]  ;;  %v5160_v57 = vld [vmem:[#allocation23_spill] sm:$0xff] }
 0x2ef   : > { %v2002_v21 = vsel %vm1998_vm3, %v1937_v32, %v1684_v36  ;;  %v2001_v28 = vsel %vm1998_vm3, %v1936_v13, %v1682_v59  ;;  %v1939_v47 = vsel %vm1933_vm2, %v1874_v61, %v3923_v20  ;;  %v5158_v49 = vld [vmem:[#allocation21_spill] sm:$0xff]  ;;  %v5159_v32 = vld [vmem:[#allocation102_spill] sm:$0xff]  ;;  %v5163_v61 = vld [vmem:[#allocation103_spill] sm:$0xff] }
 0x2f0   : > { %2066 = vst [vmem:[%s3148_s21 + $0x18] sm:$0xff] %v2002_v21  ;;  %2065 = vst [vmem:[%s3148_s21 + $0x10] sm:$0xff] %v2001_v28  ;;  %1799 = vrot.lane.b32.xlu1 %v1098_v42, %s2690_s29  ;;  %1797 = vrot.lane.b32.xlu0 %v1097_v7, %s2690_s29  ;;  %v1876_v20 = vsel %vm699_vm1, %v5158_v49, %v5157_v39  ;;  %v1875_v62 = vsel %vm699_vm1, %v5160_v57, %v5159_v32  ;;  %v5162_v51 = vld [vmem:[#allocation25_spill] sm:$0xff]  ;;  %v5168_v49 = vld [vmem:[#allocation31_spill] sm:$0xff] }
 0x2f1   : > { %v1941_v13 = vsel %vm1933_vm2, %v1876_v20, %v3931_v4  ;;  %v1940_v36 = vsel %vm1933_vm2, %v1875_v62, %v3933_v33  ;;  %v1877_v4 = vsel %vm699_vm1, %v5164_v58, %v5163_v61  ;;  %v5167_v39 = vld [vmem:[#allocation77_spill] sm:$0xff] }
 0x2f2   : > { %v1688_v30 = vpop.permute.xlu1 %1687  ;;  %v1686_v42 = vpop.permute.xlu0 %1685  ;;  %v1942_v23 = vsel %vm1933_vm2, %v1877_v4, %v3943_v60  ;;  %v5173_v4 = vld [vmem:[#allocation104_spill] sm:$0xff] }
 0x2f3   : > { %v2004_v7 = vsel %vm1998_vm3, %v1939_v47, %v1688_v30  ;;  %v2003_v37 = vsel %vm1998_vm3, %v1938_v43, %v1686_v42  ;;  %v5165_v42 = vld [vmem:[#allocation76_spill] sm:$0xff] }
 0x2f4   : > { %2068 = vst [vmem:[%s3148_s21 + $0x28] sm:$0xff] %v2004_v7  ;;  %2067 = vst [vmem:[%s3148_s21 + $0x20] sm:$0xff] %v2003_v37  ;;  %1803 = vrot.lane.b32.xlu1 %v1100_v35, %s2690_s29  ;;  %1801 = vrot.lane.b32.xlu0 %v1099_v3, %s2690_s29  ;;  %v5161_v3 = vld [vmem:[#allocation74_spill] sm:$0xff]  ;;  %v5166_v7 = vld [vmem:[#allocation29_spill] sm:$0xff] }
 0x2f5   : > { %v1878_v40 = vsel %vm699_vm1, %v5162_v51, %v5161_v3  ;;  %v1880_v37 = vsel %vm699_vm1, %v5166_v7, %v5165_v42 }
 0x2f6   : > { %v1692_v59 = vpop.permute.xlu1 %1691  ;;  %v1690_v21 = vpop.permute.xlu0 %1689  ;;  %v1943_v33 = vsel %vm1933_vm2, %v1878_v40, %v3941_v16  ;;  %v1879_v16 = vsel %vm699_vm1, %v5168_v49, %v5167_v39  ;;  %v1945_v60 = vsel %vm1933_vm2, %v1880_v37, %v3951_v2  ;;  %v5177_v39 = vld [vmem:[#allocation106_spill] sm:$0xff]  ;;  %v5178_v49 = vld [vmem:[#allocation41_spill] sm:$0xff] }
 0x2f7   : > { %v2006_v28 = vsel %vm1998_vm3, %v1941_v13, %v1692_v59  ;;  %v2005_v35 = vsel %vm1998_vm3, %v1940_v36, %v1690_v21  ;;  %v1944_v20 = vsel %vm1933_vm2, %v1879_v16, %v3953_v56  ;;  %v5169_v36 = vld [vmem:[#allocation78_spill] sm:$0xff]  ;;  %v5170_v59 = vld [vmem:[#allocation33_spill] sm:$0xff]  ;;  %v1886_v16 = vsel %vm699_vm1, %v5178_v49, %v5177_v39  ;;  %v5192_v49 = vld [vmem:[#allocation55_spill] sm:$0xff] }
 0x2f8   : > { %2070 = vst [vmem:[%s3148_s21 + $0x38] sm:$0xff] %v2006_v28  ;;  %2069 = vst [vmem:[%s3148_s21 + $0x30] sm:$0xff] %v2005_v35  ;;  %v1882_v21 = vsel %vm699_vm1, %v5170_v59, %v5169_v36  ;;  %v5171_v28 = vld [vmem:[#allocation79_spill] sm:$0xff]  ;;  %v5181_v59 = vld [vmem:[#allocation108_spill] sm:$0xff] }
 0x2f9   : > { %v5172_v35 = vld [vmem:[#allocation35_spill] sm:$0xff]  ;;  %v1947_v56 = vsel %vm1933_vm2, %v1882_v21, %v3961_v26  ;;  %v5182_v21 = vld [vmem:[#allocation45_spill] sm:$0xff] }
 0x2fa   : > { %v1696_v31 = vpop.permute.xlu1 %1695  ;;  %v1694_v47 = vpop.permute.xlu0 %1693  ;;  %v1881_v2 = vsel %vm699_vm1, %v5172_v35, %v5171_v28  ;;  %v1888_v28 = vsel %vm699_vm1, %v5182_v21, %v5181_v59  ;;  %v5183_v35 = vld [vmem:[#allocation109_spill] sm:$0xff] }
 0x2fb   : > { %v2008_v43 = vsel %vm1998_vm3, %v1943_v33, %v1696_v31  ;;  %v2007_v30 = vsel %vm1998_vm3, %v1942_v23, %v1694_v47  ;;  %v1946_v3 = vsel %vm1933_vm2, %v1881_v2, %v3963_v29  ;;  %v5174_v33 = vld [vmem:[#allocation37_spill] sm:$0xff]  ;;  %v5176_v47 = vld [vmem:[#allocation39_spill] sm:$0xff] }
 0x2fc   : > { %2072 = vst [vmem:[%s3148_s21 + $0x48] sm:$0xff] %v2008_v43  ;;  %2071 = vst [vmem:[%s3148_s21 + $0x40] sm:$0xff] %v2007_v30  ;;  %v1884_v23 = vsel %vm699_vm1, %v5174_v33, %v5173_v4  ;;  %v5175_v31 = vld [vmem:[#allocation105_spill] sm:$0xff]  ;;  %v5184_v2 = vld [vmem:[#allocation47_spill] sm:$0xff] }
 0x2fd   : > { %v1883_v26 = vsel %vm699_vm1, %v5176_v47, %v5175_v31  ;;  %v1949_v29 = vsel %vm1933_vm2, %v1884_v23, %v3971_v25  ;;  %v5186_v4 = vld [vmem:[#allocation49_spill] sm:$0xff]  ;;  %v5187_v23 = vld [vmem:[#allocation111_spill] sm:$0xff] }
 0x2fe   : > { %v1700_v32 = vpop.permute.xlu1 %1699  ;;  %v1698_v57 = vpop.permute.xlu0 %1697  ;;  %v1948_v43 = vsel %vm1933_vm2, %v1883_v26, %v3973_v0  ;;  %v1951_v0 = vsel %vm1933_vm2, %v1886_v16, %v3981_v52  ;;  %v1887_v52 = vsel %vm699_vm1, %v5184_v2, %v5183_v35  ;;  %v5188_v31 = vld [vmem:[#allocation51_spill] sm:$0xff]  ;;  %v5191_v39 = vld [vmem:[#allocation113_spill] sm:$0xff] }
 0x2ff   : > { %v2010_v62 = vsel %vm1998_vm3, %v1945_v60, %v1700_v32  ;;  %v2009_v13 = vsel %vm1998_vm3, %v1944_v20, %v1698_v57  ;;  %v5179_v60 = vld [vmem:[#allocation107_spill] sm:$0xff] }
 0x300   : > { %2074 = vst [vmem:[%s3148_s21 + $0x58] sm:$0xff] %v2010_v62  ;;  %2073 = vst [vmem:[%s3148_s21 + $0x50] sm:$0xff] %v2009_v13  ;;  %v5180_v20 = vld [vmem:[#allocation43_spill] sm:$0xff] }
 0x301   : > { %v1885_v25 = vsel %vm699_vm1, %v5180_v20, %v5179_v60 }
 0x302   : > { %v1704_v51 = vpop.permute.xlu1 %1703  ;;  %v1702_v40 = vpop.permute.xlu0 %1701  ;;  %v1950_v32 = vsel %vm1933_vm2, %v1885_v25, %v3983_v44  ;;  %v1953_v44 = vsel %vm1933_vm2, %v1888_v28, %v3991_v18  ;;  %v1889_v18 = vsel %vm699_vm1, %v5188_v31, %v5187_v23  ;;  %v5201_v23 = vld [vmem:[#allocation118_spill] sm:$0xff]  ;;  %v5202_v31 = vld [vmem:[#allocation65_spill] sm:$0xff] }
 0x303   : > { %v2012_v61 = vsel %vm1998_vm3, %v1947_v56, %v1704_v51  ;;  %v2011_v58 = vsel %vm1998_vm3, %v1946_v3, %v1702_v40  ;;  %v1952_v56 = vsel %vm1933_vm2, %v1887_v52, %v3993_v9  ;;  %v1954_v47 = vsel %vm1933_vm2, %v1889_v18, %v4003_v46  ;;  %v5197_v52 = vld [vmem:[#allocation116_spill] sm:$0xff] }
 0x304   : > { %2076 = vst [vmem:[%s3148_s21 + $0x68] sm:$0xff] %v2012_v61  ;;  %2075 = vst [vmem:[%s3148_s21 + $0x60] sm:$0xff] %v2011_v58  ;;  %v5185_v58 = vld [vmem:[#allocation110_spill] sm:$0xff]  ;;  %v1898_v18 = vsel %vm699_vm1, %v5202_v31, %v5201_v23 }
 0x305   : > { %v1890_v33 = vsel %vm699_vm1, %v5186_v4, %v5185_v58 }
 0x306   : > { %v1708_v30 = vpop.permute.xlu1 %1707  ;;  %v1706_v42 = vpop.permute.xlu0 %1705  ;;  %v1955_v9 = vsel %vm1933_vm2, %v1890_v33, %v4001_v17  ;;  %v1891_v17 = vsel %vm699_vm1, %v5192_v49, %v5191_v39  ;;  %v5207_v49 = vld [vmem:[#allocation121_spill] sm:$0xff] }
 0x307   : > { %v2014_v7 = vsel %vm1998_vm3, %v1949_v29, %v1708_v30  ;;  %v2013_v37 = vsel %vm1998_vm3, %v1948_v43, %v1706_v42  ;;  %v5189_v42 = vld [vmem:[#allocation112_spill] sm:$0xff]  ;;  %v1956_v16 = vsel %vm1933_vm2, %v1891_v17, %v4013_v27  ;;  %v5208_v17 = vld [vmem:[#allocation71_spill] sm:$0xff] }
 0x308   : > { %2078 = vst [vmem:[%s3148_s21 + $0x78] sm:$0xff] %v2014_v7  ;;  %2077 = vst [vmem:[%s3148_s21 + $0x70] sm:$0xff] %v2013_v37  ;;  %v5190_v7 = vld [vmem:[#allocation53_spill] sm:$0xff] }
 0x309   : > { %v1892_v37 = vsel %vm699_vm1, %v5190_v7, %v5189_v42  ;;  %v5205_v7 = vld [vmem:[#allocation120_spill] sm:$0xff] }
 0x30a   : > { %v1712_v57 = vpop.permute.xlu1 %1711  ;;  %v1710_v62 = vpop.permute.xlu0 %1709  ;;  %v1957_v46 = vsel %vm1933_vm2, %v1892_v37, %v4011_v54  ;;  %v5206_v37 = vld [vmem:[#allocation69_spill] sm:$0xff] }
 0x30b   : > { %v2016_v13 = vsel %vm1998_vm3, %v1951_v0, %v1712_v57  ;;  %v2015_v36 = vsel %vm1998_vm3, %v1950_v32, %v1710_v62  ;;  %v5193_v32 = vld [vmem:[#allocation114_spill] sm:$0xff]  ;;  %v5194_v57 = vld [vmem:[#allocation57_spill] sm:$0xff]  ;;  %v1900_v39 = vsel %vm699_vm1, %v5206_v37, %v5205_v7 }
 0x30c   : > { %2080 = vst [vmem:[%s3148_s21 + $0x88] sm:$0xff] %v2016_v13  ;;  %2079 = vst [vmem:[%s3148_s21 + $0x80] sm:$0xff] %v2015_v36  ;;  %v1894_v62 = vsel %vm699_vm1, %v5194_v57, %v5193_v32  ;;  %v5195_v13 = vld [vmem:[#allocation115_spill] sm:$0xff]  ;;  %v5210_v32 = vld [vmem:[#allocation10_spill] sm:$0xff] }
 0x30d   : > { %v5196_v36 = vld [vmem:[#allocation59_spill] sm:$0xff]  ;;  %v1959_v27 = vsel %vm1933_vm2, %v1894_v62, %v4021_v11 }
 0x30e   : > { %v1716_v3 = vpop.permute.xlu1 %1715  ;;  %v1714_v51 = vpop.permute.xlu0 %1713  ;;  %v1893_v54 = vsel %vm699_vm1, %v5196_v36, %v5195_v13  ;;  %v5211_v62 = vld [vmem:[#allocation123_spill] sm:$0xff]  ;;  %v5212_v13 = vld [vmem:[#allocation12_spill] sm:$0xff] }
 0x30f   : > { %v2018_v40 = vsel %vm1998_vm3, %v1953_v44, %v1716_v3  ;;  %v2017_v61 = vsel %vm1998_vm3, %v1952_v56, %v1714_v51  ;;  %v1958_v59 = vsel %vm1933_vm2, %v1893_v54, %v4023_v48  ;;  %v5198_v44 = vld [vmem:[#allocation61_spill] sm:$0xff]  ;;  %v5200_v51 = vld [vmem:[#allocation63_spill] sm:$0xff] }
 0x310   : > { %2082 = vst [vmem:[%s3148_s21 + $0x98] sm:$0xff] %v2018_v40  ;;  %2081 = vst [vmem:[%s3148_s21 + $0x90] sm:$0xff] %v2017_v61  ;;  %v1896_v56 = vsel %vm699_vm1, %v5198_v44, %v5197_v52  ;;  %v5199_v3 = vld [vmem:[#allocation117_spill] sm:$0xff]  ;;  %v5216_v44 = vld [vmem:[#allocation16_spill] sm:$0xff] }
 0x311   : > { %v1895_v11 = vsel %vm699_vm1, %v5200_v51, %v5199_v3  ;;  %v1961_v48 = vsel %vm1933_vm2, %v1896_v56, %v4031_v55  ;;  %v5215_v52 = vld [vmem:[#allocation125_spill] sm:$0xff] }
 0x312   : > { %v1720_v26 = vpop.permute.xlu1 %1719  ;;  %v1718_v29 = vpop.permute.xlu0 %1717  ;;  %v1960_v40 = vsel %vm1933_vm2, %v1895_v11, %v4033_v41  ;;  %v1963_v41 = vsel %vm1933_vm2, %v1898_v18, %v4041_v63  ;;  %v1899_v63 = vsel %vm699_vm1, %v5208_v17, %v5207_v49  ;;  %v5225_v49 = vld [vmem:[#allocation130_spill] sm:$0xff] }
 0x313   : > { %v2020_v43 = vsel %vm1998_vm3, %v1955_v9, %v1720_v26  ;;  %v2019_v30 = vsel %vm1998_vm3, %v1954_v47, %v1718_v29  ;;  %v5203_v9 = vld [vmem:[#allocation119_spill] sm:$0xff]  ;;  %v5226_v17 = vld [vmem:[#allocation26_spill] sm:$0xff] }
 0x314   : > { %2084 = vst [vmem:[%s3148_s21 + $0xa8] sm:$0xff] %v2020_v43  ;;  %2083 = vst [vmem:[%s3148_s21 + $0xa0] sm:$0xff] %v2019_v30  ;;  %v5204_v47 = vld [vmem:[#allocation67_spill] sm:$0xff] }
 0x315   : > { %v1897_v55 = vsel %vm699_vm1, %v5204_v47, %v5203_v9 }
 0x316   : > { %v1724_v60 = vpop.permute.xlu1 %1723  ;;  %v1722_v20 = vpop.permute.xlu0 %1721  ;;  %v1962_v26 = vsel %vm1933_vm2, %v1897_v55, %v4043_v12  ;;  %v1965_v12 = vsel %vm1933_vm2, %v1900_v39, %v4051_v6  ;;  %v1901_v6 = vsel %vm699_vm1, %v5212_v13, %v5211_v62  ;;  %v5221_v55 = vld [vmem:[#allocation128_spill] sm:$0xff]  ;;  %v5231_v13 = vld [vmem:[#allocation133_spill] sm:$0xff] }
 0x317   : > { %v2022_v25 = vsel %vm1998_vm3, %v1957_v46, %v1724_v60  ;;  %v2021_v0 = vsel %vm1998_vm3, %v1956_v16, %v1722_v20  ;;  %v1964_v46 = vsel %vm1933_vm2, %v1899_v63, %v4053_v38  ;;  %v1966_v36 = vsel %vm1933_vm2, %v1901_v6, %v4063_v8  ;;  %v5232_v6 = vld [vmem:[#allocation32_spill] sm:$0xff] }
 0x318   : > { %2086 = vst [vmem:[%s3148_s21 + $0xb8] sm:$0xff] %v2022_v25  ;;  %2085 = vst [vmem:[%s3148_s21 + $0xb0] sm:$0xff] %v2021_v0  ;;  %v5209_v0 = vld [vmem:[#allocation122_spill] sm:$0xff]  ;;  %v1910_v63 = vsel %vm699_vm1, %v5226_v17, %v5225_v49 }
 0x319   : > { %v1902_v57 = vsel %vm699_vm1, %v5210_v32, %v5209_v0  ;;  %v5229_v32 = vld [vmem:[#allocation132_spill] sm:$0xff] }
 0x31a   : > { %v1728_v21 = vpop.permute.xlu1 %1727  ;;  %v1726_v28 = vpop.permute.xlu0 %1725  ;;  %v1967_v38 = vsel %vm1933_vm2, %v1902_v57, %v4061_v15  ;;  %v1903_v15 = vsel %vm699_vm1, %v5216_v44, %v5215_v52  ;;  %v5230_v57 = vld [vmem:[#allocation30_spill] sm:$0xff]  ;;  %v5236_v52 = vld [vmem:[#allocation36_spill] sm:$0xff]  ;;  %v5237_v44 = vld [vmem:[#allocation75_spill] sm:$0xff] }
 0x31b   : > { %v2024_v35 = vsel %vm1998_vm3, %v1959_v27, %v1728_v21  ;;  %v2023_v2 = vsel %vm1998_vm3, %v1958_v59, %v1726_v28  ;;  %v5213_v28 = vld [vmem:[#allocation124_spill] sm:$0xff]  ;;  %v1968_v56 = vsel %vm1933_vm2, %v1903_v15, %v4073_v10  ;;  %v1912_v62 = vsel %vm699_vm1, %v5230_v57, %v5229_v32  ;;  %v5238_v15 = vld [vmem:[#allocation159_spill] sm:$0xff] }
 0x31c   : > { %2088 = vst [vmem:[%s3148_s21 + $0xc8] sm:$0xff] %v2024_v35  ;;  %2087 = vst [vmem:[%s3148_s21 + $0xc0] sm:$0xff] %v2023_v2  ;;  %v5214_v35 = vld [vmem:[#allocation14_spill] sm:$0xff] }
 0x31d   : > { %v1904_v2 = vsel %vm699_vm1, %v5214_v35, %v5213_v28  ;;  %v5234_v28 = vld [vmem:[#allocation34_spill] sm:$0xff] }
 0x31e   : > { %v1732_v61 = vpop.permute.xlu1 %1731  ;;  %v1730_v58 = vpop.permute.xlu0 %1729  ;;  %v1969_v8 = vsel %vm1933_vm2, %v1904_v2, %v4071_v22  ;;  %v5235_v2 = vld [vmem:[#allocation135_spill] sm:$0xff] }
 0x31f   : > { %v2026_v4 = vsel %vm1998_vm3, %v1961_v48, %v1732_v61  ;;  %v2025_v33 = vsel %vm1998_vm3, %v1960_v40, %v1730_v58  ;;  %v5217_v40 = vld [vmem:[#allocation126_spill] sm:$0xff] }
 0x320   : > { %2090 = vst [vmem:[%s3148_s21 + $0xd8] sm:$0xff] %v2026_v4  ;;  %2089 = vst [vmem:[%s3148_s21 + $0xd0] sm:$0xff] %v2025_v33  ;;  %v5218_v61 = vld [vmem:[#allocation18_spill] sm:$0xff]  ;;  %v5219_v4 = vld [vmem:[#allocation127_spill] sm:$0xff] }
 0x321   : > { %v1906_v58 = vsel %vm699_vm1, %v5218_v61, %v5217_v40  ;;  %v5220_v33 = vld [vmem:[#allocation20_spill] sm:$0xff]  ;;  %v5240_v40 = vld [vmem:[#allocation38_spill] sm:$0xff] }
 0x322   : > { %v1736_v29 = vpop.permute.xlu1 %1735  ;;  %v1734_v43 = vpop.permute.xlu0 %1733  ;;  %v1905_v22 = vsel %vm699_vm1, %v5220_v33, %v5219_v4  ;;  %v1971_v10 = vsel %vm1933_vm2, %v1906_v58, %v4081_v53  ;;  %v5241_v58 = vld [vmem:[#allocation139_spill] sm:$0xff]  ;;  %v5242_v4 = vld [vmem:[#allocation40_spill] sm:$0xff] }
 0x323   : > { %v2028_v30 = vsel %vm1998_vm3, %v1963_v41, %v1736_v29  ;;  %v2027_v42 = vsel %vm1998_vm3, %v1962_v26, %v1734_v43  ;;  %v1970_v23 = vsel %vm1933_vm2, %v1905_v22, %v4083_v34  ;;  %v5222_v41 = vld [vmem:[#allocation22_spill] sm:$0xff]  ;;  %v5223_v29 = vld [vmem:[#allocation129_spill] sm:$0xff]  ;;  %v5224_v43 = vld [vmem:[#allocation24_spill] sm:$0xff]  ;;  %v1915_v33 = vsel %vm699_vm1, %v5242_v4, %v5241_v58 }
 0x324   : > { %2092 = vst [vmem:[%s3148_s21 + $0xe8] sm:$0xff] %v2028_v30  ;;  %2091 = vst [vmem:[%s3148_s21 + $0xe0] sm:$0xff] %v2027_v42  ;;  %v1908_v26 = vsel %vm699_vm1, %v5222_v41, %v5221_v55  ;;  %v1907_v53 = vsel %vm699_vm1, %v5224_v43, %v5223_v29  ;;  %v5243_v22 = vld [vmem:[#allocation136_spill] sm:$0xff]  ;;  %v5245_v41 = vld [vmem:[#allocation142_spill] sm:$0xff] }
 0x325   : > { %v1973_v34 = vsel %vm1933_vm2, %v1908_v26, %v4091_v5  ;;  %v1972_v30 = vsel %vm1933_vm2, %v1907_v53, %v4093_v19  ;;  %v1975_v19 = vsel %vm1933_vm2, %v1910_v63, %v4101_v45  ;;  %v1911_v45 = vsel %vm699_vm1, %v5232_v6, %v5231_v13  ;;  %v5246_v26 = vld [vmem:[#allocation42_spill] sm:$0xff]  ;;  %v5247_v43 = vld [vmem:[#allocation143_spill] sm:$0xff]  ;;  %v5248_v53 = vld [vmem:[#allocation44_spill] sm:$0xff] }
 0x326   : > { %v1740_v16 = vpop.permute.xlu1 %1739  ;;  %v1738_v60 = vpop.permute.xlu0 %1737  ;;  %v1918_v29 = vsel %vm699_vm1, %v5246_v26, %v5245_v41  ;;  %v5274_v26 = vld [vmem:[#allocation87_spill] sm:$0xff] }
 0x327   : > { %v2030_v20 = vsel %vm1998_vm3, %v1965_v12, %v1740_v16  ;;  %v2029_v25 = vsel %vm1998_vm3, %v1964_v46, %v1738_v60  ;;  %v5227_v12 = vld [vmem:[#allocation131_spill] sm:$0xff]  ;;  %v5228_v46 = vld [vmem:[#allocation28_spill] sm:$0xff] }
 0x328   : > { %2094 = vst [vmem:[%s3148_s21 + $0xf8] sm:$0xff] %v2030_v20  ;;  %2093 = vst [vmem:[%s3148_s21 + $0xf0] sm:$0xff] %v2029_v25  ;;  %v1909_v5 = vsel %vm699_vm1, %v5228_v46, %v5227_v12  ;;  %v5251_v12 = vld [vmem:[#allocation144_spill] sm:$0xff]  ;;  %v5252_v46 = vld [vmem:[#allocation46_spill] sm:$0xff] }
 0x329   : > { %v1974_v16 = vsel %vm1933_vm2, %v1909_v5, %v4103_v24  ;;  %v1977_v24 = vsel %vm1933_vm2, %v1912_v62, %v4111_v50  ;;  %v1913_v50 = vsel %vm699_vm1, %v5236_v52, %v5235_v2  ;;  %v1920_v5 = vsel %vm699_vm1, %v5252_v46, %v5251_v12  ;;  %v5279_v12 = vld [vmem:[#allocation88_spill] sm:$0xff] }
 0x32a   : > { %v1744_v54 = vpop.permute.xlu1 %1743  ;;  %v1742_v27 = vpop.permute.xlu0 %1741 }
 0x32b   : > { %v2032_v59 = vsel %vm1998_vm3, %v1967_v38, %v1744_v54  ;;  %v2031_v21 = vsel %vm1998_vm3, %v1966_v36, %v1742_v27  ;;  %v1976_v38 = vsel %vm1933_vm2, %v1911_v45, %v4113_v1  ;;  %v5257_v45 = vld [vmem:[#allocation146_spill] sm:$0xff] }
 0x32c   : > { %2096 = vst [vmem:[%s3148_s21 + $0x108] sm:$0xff] %v2032_v59  ;;  %2095 = vst [vmem:[%s3148_s21 + $0x100] sm:$0xff] %v2031_v21  ;;  %v5233_v21 = vld [vmem:[#allocation134_spill] sm:$0xff] }
 0x32d   : > { %v1914_v35 = vsel %vm699_vm1, %v5234_v28, %v5233_v21  ;;  %v5262_v28 = vld [vmem:[#allocation83_spill] sm:$0xff] }
 0x32e   : > { %v1748_v3 = vpop.permute.xlu1 %1747  ;;  %v1746_v51 = vpop.permute.xlu0 %1745  ;;  %v1979_v1 = vsel %vm1933_vm2, %v1914_v35, %v5237_v44 }
 0x32f   : > { %v2034_v11 = vsel %vm1998_vm3, %v1969_v8, %v1748_v3  ;;  %v2033_v48 = vsel %vm1998_vm3, %v1968_v56, %v1746_v51  ;;  %v1978_v8 = vsel %vm1933_vm2, %v1913_v50, %v5238_v15  ;;  %v5264_v15 = vld [vmem:[#allocation54_spill] sm:$0xff] }
 0x330   : > { %2098 = vst [vmem:[%s3148_s21 + $0x118] sm:$0xff] %v2034_v11  ;;  %2097 = vst [vmem:[%s3148_s21 + $0x110] sm:$0xff] %v2033_v48  ;;  %v5239_v48 = vld [vmem:[#allocation138_spill] sm:$0xff] }
 0x331   : > { %v1916_v61 = vsel %vm699_vm1, %v5240_v40, %v5239_v48  ;;  %v5268_v40 = vld [vmem:[#allocation85_spill] sm:$0xff] }
 0x332   : > { %v1752_v31 = vpop.permute.xlu1 %1751  ;;  %v1750_v18 = vpop.permute.xlu0 %1749 }
 0x333   : > { %v2036_v9 = vsel %vm1998_vm3, %v1971_v10, %v1752_v31  ;;  %v2035_v47 = vsel %vm1998_vm3, %v1970_v23, %v1750_v18  ;;  %v1981_v10 = vsel %vm1933_vm2, %v1916_v61, %v5243_v22  ;;  %v5244_v23 = vld [vmem:[#allocation137_spill] sm:$0xff] }
 0x334   : > { %2100 = vst [vmem:[%s3148_s21 + $0x128] sm:$0xff] %v2036_v9  ;;  %2099 = vst [vmem:[%s3148_s21 + $0x120] sm:$0xff] %v2035_v47  ;;  %v1980_v31 = vsel %vm1933_vm2, %v1915_v33, %v5244_v23  ;;  %v5270_v23 = vld [vmem:[#allocation58_spill] sm:$0xff] }
 0x336   : > { %v1756_v42 = vpop.permute.xlu1 %1755  ;;  %v1754_v7 = vpop.permute.xlu0 %1753 }
 0x337   : > { %v2038_v37 = vsel %vm1998_vm3, %v1973_v34, %v1756_v42  ;;  %v2037_v39 = vsel %vm1998_vm3, %v1972_v30, %v1754_v7  ;;  %v1917_v34 = vsel %vm699_vm1, %v5248_v53, %v5247_v43  ;;  %v5249_v30 = vld [vmem:[#allocation140_spill] sm:$0xff]  ;;  %v5250_v7 = vld [vmem:[#allocation141_spill] sm:$0xff] }
 0x338   : > { %2102 = vst [vmem:[%s3148_s21 + $0x138] sm:$0xff] %v2038_v37  ;;  %2101 = vst [vmem:[%s3148_s21 + $0x130] sm:$0xff] %v2037_v39  ;;  %v1983_v42 = vsel %vm1933_vm2, %v1918_v29, %v5249_v30  ;;  %v1982_v37 = vsel %vm1933_vm2, %v1917_v34, %v5250_v7  ;;  %v5276_v7 = vld [vmem:[#allocation62_spill] sm:$0xff] }
 0x33a   : > { %v1760_v60 = vpop.permute.xlu1 %1759  ;;  %v1758_v20 = vpop.permute.xlu0 %1757 }
 0x33b   : > { %v2040_v25 = vsel %vm1998_vm3, %v1975_v19, %v1760_v60  ;;  %v2039_v0 = vsel %vm1998_vm3, %v1974_v16, %v1758_v20  ;;  %v5253_v19 = vld [vmem:[#allocation145_spill] sm:$0xff]  ;;  %v5254_v16 = vld [vmem:[#allocation48_spill] sm:$0xff] }
 0x33c   : > { %2104 = vst [vmem:[%s3148_s21 + $0x148] sm:$0xff] %v2040_v25  ;;  %2103 = vst [vmem:[%s3148_s21 + $0x140] sm:$0xff] %v2039_v0  ;;  %v1919_v60 = vsel %vm699_vm1, %v5254_v16, %v5253_v19  ;;  %v5255_v20 = vld [vmem:[#allocation80_spill] sm:$0xff]  ;;  %v5256_v0 = vld [vmem:[#allocation81_spill] sm:$0xff] }
 0x33d   : > { %v1985_v25 = vsel %vm1933_vm2, %v1920_v5, %v5255_v20  ;;  %v1984_v32 = vsel %vm1933_vm2, %v1919_v60, %v5256_v0  ;;  %v5280_v20 = vld [vmem:[#allocation154_spill] sm:$0xff] }
 0x33e   : > { %v1764_v36 = vpop.permute.xlu1 %1763  ;;  %v1762_v54 = vpop.permute.xlu0 %1761 }
 0x33f   : > { %v2042_v27 = vsel %vm1998_vm3, %v1977_v24, %v1764_v36  ;;  %v2041_v59 = vsel %vm1998_vm3, %v1976_v38, %v1762_v54  ;;  %v5258_v24 = vld [vmem:[#allocation50_spill] sm:$0xff]  ;;  %v5259_v36 = vld [vmem:[#allocation147_spill] sm:$0xff]  ;;  %v5260_v54 = vld [vmem:[#allocation52_spill] sm:$0xff] }
 0x340   : > { %2106 = vst [vmem:[%s3148_s21 + $0x158] sm:$0xff] %v2042_v27  ;;  %2105 = vst [vmem:[%s3148_s21 + $0x150] sm:$0xff] %v2041_v59  ;;  %v1922_v38 = vsel %vm699_vm1, %v5258_v24, %v5257_v45  ;;  %v1921_v27 = vsel %vm699_vm1, %v5260_v54, %v5259_v36  ;;  %v5261_v59 = vld [vmem:[#allocation82_spill] sm:$0xff] }
 0x341   : > { %v1987_v21 = vsel %vm1933_vm2, %v1922_v38, %v5261_v59  ;;  %v1986_v35 = vsel %vm1933_vm2, %v1921_v27, %v5262_v28  ;;  %v5286_v27 = vld [vmem:[#allocation92_spill] sm:$0xff]  ;;  %v5287_v59 = vld [vmem:[#allocation70_spill] sm:$0xff]  ;;  %v5288_v28 = vld [vmem:[#allocation93_spill] sm:$0xff] }
 0x342   : > { %v1768_v56 = vpop.permute.xlu1 %1767  ;;  %v1766_v3 = vpop.permute.xlu0 %1765 }
 0x343   : > { %v2044_v51 = vsel %vm1998_vm3, %v1979_v1, %v1768_v56  ;;  %v2043_v11 = vsel %vm1998_vm3, %v1978_v8, %v1766_v3  ;;  %v5263_v1 = vld [vmem:[#allocation148_spill] sm:$0xff]  ;;  %v5265_v56 = vld [vmem:[#allocation149_spill] sm:$0xff] }
 0x344   : > { %2108 = vst [vmem:[%s3148_s21 + $0x168] sm:$0xff] %v2044_v51  ;;  %2107 = vst [vmem:[%s3148_s21 + $0x160] sm:$0xff] %v2043_v11  ;;  %v1924_v8 = vsel %vm699_vm1, %v5264_v15, %v5263_v1  ;;  %v5266_v3 = vld [vmem:[#allocation56_spill] sm:$0xff] }
 0x345   : > { %v1923_v51 = vsel %vm699_vm1, %v5266_v3, %v5265_v56  ;;  %v5267_v11 = vld [vmem:[#allocation84_spill] sm:$0xff] }
 0x346   : > { %v1772_v18 = vpop.permute.xlu1 %1771  ;;  %v1770_v9 = vpop.permute.xlu0 %1769  ;;  %v1989_v48 = vsel %vm1933_vm2, %v1924_v8, %v5267_v11  ;;  %v1988_v61 = vsel %vm1933_vm2, %v1923_v51, %v5268_v40 }
 0x347   : > { %v2046_v47 = vsel %vm1998_vm3, %v1981_v10, %v1772_v18  ;;  %v2045_v55 = vsel %vm1998_vm3, %v1980_v31, %v1770_v9  ;;  %v5269_v10 = vld [vmem:[#allocation150_spill] sm:$0xff]  ;;  %v5271_v18 = vld [vmem:[#allocation151_spill] sm:$0xff]  ;;  %v5272_v9 = vld [vmem:[#allocation60_spill] sm:$0xff] }
 0x348   : > { %2110 = vst [vmem:[%s3148_s21 + $0x178] sm:$0xff] %v2046_v47  ;;  %2109 = vst [vmem:[%s3148_s21 + $0x170] sm:$0xff] %v2045_v55  ;;  %v1926_v31 = vsel %vm699_vm1, %v5270_v23, %v5269_v10  ;;  %v1925_v47 = vsel %vm699_vm1, %v5272_v9, %v5271_v18  ;;  %v5273_v55 = vld [vmem:[#allocation86_spill] sm:$0xff] }
 0x349   : > { %v1991_v41 = vsel %vm1933_vm2, %v1926_v31, %v5273_v55  ;;  %v1990_v29 = vsel %vm1933_vm2, %v1925_v47, %v5274_v26 }
 0x34a   : > { %v1776_v39 = vpop.permute.xlu1 %1775  ;;  %v1774_v49 = vpop.permute.xlu0 %1773 }
 0x34b   : > { %v2048_v17 = vsel %vm1998_vm3, %v1983_v42, %v1776_v39  ;;  %v2047_v63 = vsel %vm1998_vm3, %v1982_v37, %v1774_v49  ;;  %v5275_v42 = vld [vmem:[#allocation152_spill] sm:$0xff]  ;;  %v5277_v39 = vld [vmem:[#allocation153_spill] sm:$0xff] }
 0x34c   : > { %2112 = vst [vmem:[%s3148_s21 + $0x188] sm:$0xff] %v2048_v17  ;;  %2111 = vst [vmem:[%s3148_s21 + $0x180] sm:$0xff] %v2047_v63  ;;  %v1928_v37 = vsel %vm699_vm1, %v5276_v7, %v5275_v42  ;;  %v5278_v49 = vld [vmem:[#allocation64_spill] sm:$0xff] }
 0x34d   : > { %v1927_v17 = vsel %vm699_vm1, %v5278_v49, %v5277_v39  ;;  %v1993_v63 = vsel %vm1933_vm2, %v1928_v37, %v4191_v14 }
 0x34e   : > { %v1780_v57 = vpop.permute.xlu1 %1779  ;;  %v1778_v62 = vpop.permute.xlu0 %1777  ;;  %v1992_v46 = vsel %vm1933_vm2, %v1927_v17, %v5279_v12 }
 0x34f   : > { %v2050_v13 = vsel %vm1998_vm3, %v1985_v25, %v1780_v57  ;;  %v2049_v6 = vsel %vm1998_vm3, %v1984_v32, %v1778_v62  ;;  %v5281_v25 = vld [vmem:[#allocation66_spill] sm:$0xff]  ;;  %v5282_v32 = vld [vmem:[#allocation155_spill] sm:$0xff]  ;;  %v5283_v57 = vld [vmem:[#allocation68_spill] sm:$0xff] }
 0x350   : > { %2114 = vst [vmem:[%s3148_s21 + $0x198] sm:$0xff] %v2050_v13  ;;  %2113 = vst [vmem:[%s3148_s21 + $0x190] sm:$0xff] %v2049_v6  ;;  %v1930_v0 = vsel %vm699_vm1, %v5281_v25, %v5280_v20  ;;  %v1929_v14 = vsel %vm699_vm1, %v5283_v57, %v5282_v32  ;;  %v5284_v62 = vld [vmem:[#allocation89_spill] sm:$0xff]  ;;  %v5285_v6 = vld [vmem:[#allocation90_spill] sm:$0xff] }
 0x351   : > { %v1995_v13 = vsel %vm1933_vm2, %v1930_v0, %v5284_v62  ;;  %v1994_v45 = vsel %vm1933_vm2, %v1929_v14, %v5285_v6 }
 0x352   : > { %v1784_v2 = vpop.permute.xlu1 %1783  ;;  %v1782_v52 = vpop.permute.xlu0 %1781 }
 0x353   : > { %v2052_v50 = vsel %vm1998_vm3, %v1987_v21, %v1784_v2  ;;  %v2051_v44 = vsel %vm1998_vm3, %v1986_v35, %v1782_v52  ;;  %v1932_v21 = vsel %vm699_vm1, %v5287_v59, %v5286_v27  ;;  %v5289_v35 = vld [vmem:[#allocation72_spill] sm:$0xff]  ;;  %v5290_v52 = vld [vmem:[#allocation91_spill] sm:$0xff] }
 0x354   : > { %2116 = vst [vmem:[%s3148_s21 + $0x1a8] sm:$0xff] %v2052_v50  ;;  %2115 = vst [vmem:[%s3148_s21 + $0x1a0] sm:$0xff] %v2051_v44  ;;  %v1931_v2 = vsel %vm699_vm1, %v5289_v35, %v5288_v28  ;;  %v1997_v50 = vsel %vm1933_vm2, %v1932_v21, %v5290_v52  ;;  %v5291_v44 = vld [vmem:[#allocation160_spill] sm:$0xff] }
 0x355   : > { %v1996_v1 = vsel %vm1933_vm2, %v1931_v2, %v5291_v44 }
 0x356   : > { %v1788_v58 = vpop.permute.xlu1 %1787  ;;  %v1786_v4 = vpop.permute.xlu0 %1785 }
 0x357   : > { %v2054_v33 = vsel %vm1998_vm3, %v1989_v48, %v1788_v58  ;;  %v2053_v22 = vsel %vm1998_vm3, %v1988_v61, %v1786_v4 }
 0x358   : > { %2118 = vst [vmem:[%s3148_s21 + $0x1b8] sm:$0xff] %v2054_v33  ;;  %2117 = vst [vmem:[%s3148_s21 + $0x1b0] sm:$0xff] %v2053_v22 }
 0x35a   : > { %v1792_v43 = vpop.permute.xlu1 %1791  ;;  %v1790_v53 = vpop.permute.xlu0 %1789 }
 0x35b   : > { %v2056_v34 = vsel %vm1998_vm3, %v1991_v41, %v1792_v43  ;;  %v2055_v30 = vsel %vm1998_vm3, %v1990_v29, %v1790_v53 }
 0x35c   : > { %2120 = vst [vmem:[%s3148_s21 + $0x1c8] sm:$0xff] %v2056_v34  ;;  %2119 = vst [vmem:[%s3148_s21 + $0x1c0] sm:$0xff] %v2055_v30 }
 0x35e   : > { %v1796_v5 = vpop.permute.xlu1 %1795  ;;  %v1794_v19 = vpop.permute.xlu0 %1793 }
 0x35f   : > { %v2058_v16 = vsel %vm1998_vm3, %v1993_v63, %v1796_v5  ;;  %v2057_v60 = vsel %vm1998_vm3, %v1992_v46, %v1794_v19 }
 0x360   : > { %2122 = vst [vmem:[%s3148_s21 + $0x1d8] sm:$0xff] %v2058_v16  ;;  %2121 = vst [vmem:[%s3148_s21 + $0x1d0] sm:$0xff] %v2057_v60 }
 0x362   : > { %v1800_v24 = vpop.permute.xlu1 %1799  ;;  %v1798_v38 = vpop.permute.xlu0 %1797 }
 0x363   : > { %v2060_v36 = vsel %vm1998_vm3, %v1995_v13, %v1800_v24  ;;  %v2059_v54 = vsel %vm1998_vm3, %v1994_v45, %v1798_v38 }
 0x364   : > { %2124 = vst [vmem:[%s3148_s21 + $0x1e8] sm:$0xff] %v2060_v36  ;;  %2123 = vst [vmem:[%s3148_s21 + $0x1e0] sm:$0xff] %v2059_v54 }
 0x366   : > { %v1804_v15 = vpop.permute.xlu1 %1803  ;;  %v1802_v8 = vpop.permute.xlu0 %1801 }
 0x367   : > { %v2062_v56 = vsel %vm1998_vm3, %v1997_v50, %v1804_v15  ;;  %v2061_v3 = vsel %vm1998_vm3, %v1996_v1, %v1802_v8 }
 0x368   : > { %2126 = vst [vmem:[%s3148_s21 + $0x1f8] sm:$0xff] %v2062_v56  ;;  %2125 = vst [vmem:[%s3148_s21 + $0x1f0] sm:$0xff] %v2061_v3 }
 0x369   : > { %2614 = shalt.err (!%p2611_p4)
}
 0x36a   : > { %s2615_s10 = scalar_lea.hbm %s4676_s5, 8192  ;;  %s2619_s21 = scalar_lea.hbm %s4737_s3, 32768 }
 0x36b   : > { %p2616_p6 = scmp.ne.s32.totalorder %s4676_s5, %s2615_s10  ;;  %p2620_p2 = scmp.lt.u32.totalorder %s4676_s5, %s4737_s3 }
 0x36c   : > { %p2621_p5 = scmp.lt.u32.totalorder %s2619_s21, %s2615_s10  ;;  %p2623_p9 = scmp.lt.u32.totalorder %s2615_s10, %s4676_s5 }
 0x36d   : > { %p2617_p7 = pnand %p2616_p6, %p5292_p11 }
 0x36e   : > { %p2622_p8 = por %p2621_p5, %p2620_p2 }
 0x36f   : > { %p2618_p0 = pneg %p2617_p7 }
 0x370   : > { %p2624_p13 = por %p2623_p9, %p2622_p8 }
 0x372   : > { %p2625_p10 = pnand %p2624_p13, %p2618_p0 }
 0x374   : > { %2628 = shalt.err (!%p2625_p10)
}
 0x375   : > { %s2692_s29 = smov 128   ;;  %s2693_s24 = smov 8  }
 0x376   : > { %2504 = dma.vmem_to_hbm [thread:$0]  (%p5292_p11), %s4678_s30, 8192, %s4676_s5, %s2128_s7, %s2692_s29, %s2692_s29, %s2693_s24  }
 0x377 PF: > { %p2515_p12 = scmp.ge.s32.totalorder %s2683_s17, 2  ;;  %s2157_s15 = sand.u32 1, %s2663_s12  }
 0x378   : > { %p5293_p1 = scmp.ne.s32.totalorder %s4894_s27, 0  ;;  %s2158_s4 = scalar_lea.sflag [#allocation5], %s2157_s15 }
 0x37a   : > { %p2511_p3 = pnand %p2515_p12, %p5293_p1 }
 0x37c   : > { %2658 = dma.done.wait (!%p2511_p3), %s2158_s4, 8192  }
 0x37d   : > { %2660 = vsyncadd (!%p2511_p3), %s2158_s4, 4294959104  ;;  %s19_s17 = sadd.s32 1, %s2683_s17   ;;  %s5294_s12 = smov %s2667_s13 }
 0x37e   : > { %p16_p4 = scmp.ge.s32.totalorder %s19_s17, 6   ;;  %s5295_s13 = smov %s2671_s14 }
 0x37f   : > { %s5296_s14 = smov %s2770_s26  ;;  %s5297_s15 = smov %s2679_s16 }
 0x380   : > { %s5298_s16 = smov %s5300_s20  ;;  %18 = sbr.rel (!%p16_p4) target bundleno = 6 (0x6), region = 81 }
 0x387   :  { %2163 = vsyncpa [#allocation4], 1 }
 0x388   :  { %2165 = vsyncpa [#allocation4 + $0x1], 1 }
 0x389   :  { %2166 = vsyncpa [#allocation5], 1 }
 0x38a   :  { %2168 = vsyncpa [#allocation5 + $0x1], 1 }

</bundles_post_ra>
